<compile_context>
chip_gen: v7x
topology: tpu7x:2x2x1
jax: 0.10.0
libtpu: 0.0.40
codegen_flags: <defaults>
</compile_context>

<pallas_src>
import jax
import jax.numpy as jnp
from jax.experimental import pallas as pl
from jax.experimental.pallas import tpu as pltpu


# ----------------------------------------------------------------------------
# Fused kernel: Conv1d(k, pad=k//2) + ReLU  ->  BiLSTM (final h only)
#               -> concat -> dropout(eval = identity) -> Linear classifier.
#
#   xpad_ref : (B, S + K-1, Hin)  padded BERT stand-in features (channels-last)
#   wconv_ref: (K*Hin, F)         im2col conv weight (k-major, then channel)
#   bconv_ref: (1, F)             conv bias
#   wih_ref  : (F, 8H)            [:, :4H]=fwd, [:, 4H:]=bwd; gate order i,f,g,o
#   bih_ref  : (1, 8H)            b_ih + b_hh, both directions, folded into Zx
#   whh_f_ref: (H, 4H)            fwd recurrent weight (fused gates)
#   whh_b_ref: (H, 4H)            bwd recurrent weight (fused gates)
#   wcls_ref : (2H, L)            classifier weight.T (rows [:H]->h_fwd, [H:]->h_bwd)
#   bcls_ref : (1, L)             classifier bias
#   out_ref  : (B, L)             logits
# ----------------------------------------------------------------------------
def fused_conv_bilstm_cls_kernel(xpad_ref, wconv_ref, bconv_ref,
                                 wih_ref, bih_ref,
                                 whh_f_ref, whh_b_ref,
                                 wcls_ref, bcls_ref, out_ref):
    B, Spad, Hin = xpad_ref.shape
    KHin, F = wconv_ref.shape
    K = KHin // Hin
    S = Spad - (K - 1)
    G2 = wih_ref.shape[1]          # 8H (both directions)
    H4 = G2 // 2                   # 4H
    H = H4 // 4

    # ---- Conv1d + ReLU as one im2col matmul over the whole (B*S) slab -------
    xpad = xpad_ref[...].astype(jnp.float32)                       # (B, S+K-1, Hin)
    cols = jnp.concatenate([xpad[:, k:k + S, :] for k in range(K)],
                           axis=-1)                                # (B, S, K*Hin)
    cols = cols.reshape(B * S, KHin)
    conv = jnp.dot(cols, wconv_ref[...],
                   preferred_element_type=jnp.float32) + bconv_ref[...]
    conv = jnp.maximum(conv, 0.0)                                  # (B*S, F)

    # ---- Hoisted input projection for BOTH directions, biases folded --------
    zx = jnp.dot(conv, wih_ref[...],
                 preferred_element_type=jnp.float32) + bih_ref[...]   # (B*S, 8H)
    zx = zx.reshape(B, S, G2)

    whh_f = whh_f_ref[...]
    whh_b = whh_b_ref[...]

    def lstm_gates(z, c):
        # gate order i, f, g, o (PyTorch)
        i_g = jax.nn.sigmoid(z[:, 0 * H:1 * H])
        f_g = jax.nn.sigmoid(z[:, 1 * H:2 * H])
        g_g = jnp.tanh(z[:, 2 * H:3 * H])
        o_g = jax.nn.sigmoid(z[:, 3 * H:4 * H])
        c_new = f_g * c + i_g * g_g
        h_new = o_g * jnp.tanh(c_new)
        return h_new, c_new

    h_f = jnp.zeros((B, H), jnp.float32)
    c_f = jnp.zeros((B, H), jnp.float32)
    h_b = jnp.zeros((B, H), jnp.float32)
    c_b = jnp.zeros((B, H), jnp.float32)

    # Fully unrolled (S is small & static) -> static slices, both directions
    # interleaved in the same iteration so their MXU/EUP work overlaps.
    for t in range(S):
        z_f = zx[:, t, :H4] + jnp.dot(h_f, whh_f,
                                      preferred_element_type=jnp.float32)
        z_b = zx[:, S - 1 - t, H4:] + jnp.dot(h_b, whh_b,
                                              preferred_element_type=jnp.float32)
        h_f, c_f = lstm_gates(z_f, c_f)
        h_b, c_b = lstm_gates(z_b, c_b)

    # dropout is identity at inference; single fused classifier matmul.
    h_cat = jnp.concatenate([h_f, h_b], axis=-1)                   # (B, 2H)
    logits = jnp.dot(h_cat, wcls_ref[...],
                     preferred_element_type=jnp.float32) + bcls_ref[...]
    out_ref[...] = logits.astype(out_ref.dtype)


def fused_head(xpad, params):
    """xpad: (B, S+K-1, Hin) padded features -> logits (B, L)."""
    B = xpad.shape[0]
    L = params["bcls"].shape[1]
    vmem = pl.BlockSpec(memory_space=pltpu.MemorySpace.VMEM)
    return pl.pallas_call(
        fused_conv_bilstm_cls_kernel,
        out_shape=jax.ShapeDtypeStruct((B, L), jnp.float32),
        in_specs=[vmem] * 9,
        out_specs=vmem,
    )(xpad, params["wconv"], params["bconv"],
      params["wih"], params["bih"],
      params["whh_f"], params["whh_b"],
      params["wcls"], params["bcls"])


# ----------------------------------------------------------------------------
# Parameter construction (deterministic, synthetic) and full forward pass.
# ----------------------------------------------------------------------------
def init_params(key, vocab, hidden_size, cnn_filters, cnn_kernel_size,
                lstm_hidden, num_labels):
    ks = jax.random.split(key, 13)
    s = 0.1

    embed = s * jax.random.normal(ks[0], (vocab, hidden_size), jnp.float32)

    # Conv1d: PyTorch weight (F, Hin, K) -> im2col layout (K*Hin, F).
    conv_w_pt = s * jax.random.normal(
        ks[1], (cnn_filters, hidden_size, cnn_kernel_size), jnp.float32)
    wconv = jnp.transpose(conv_w_pt, (2, 1, 0)).reshape(
        cnn_kernel_size * hidden_size, cnn_filters)
    bconv = s * jax.random.normal(ks[2], (1, cnn_filters), jnp.float32)

    # LSTM per direction: PyTorch w_ih (4H, F), w_hh (4H, H), gate order i,f,g,o.
    def lstm_dir(kw_ih, kw_hh, kb_ih, kb_hh):
        w_ih = s * jax.random.normal(kw_ih, (4 * lstm_hidden, cnn_filters), jnp.float32)
        w_hh = s * jax.random.normal(kw_hh, (4 * lstm_hidden, lstm_hidden), jnp.float32)
        b_ih = s * jax.random.normal(kb_ih, (4 * lstm_hidden,), jnp.float32)
        b_hh = s * jax.random.normal(kb_hh, (4 * lstm_hidden,), jnp.float32)
        wih = jnp.transpose(w_ih)                       # (F, 4H), gates fused on lanes
        whh = jnp.transpose(w_hh)                       # (H, 4H)
        b = (b_ih + b_hh).reshape(1, 4 * lstm_hidden)   # (1, 4H)
        return wih, whh, b

    wih_f, whh_f, b_f = lstm_dir(ks[3], ks[4], ks[5], ks[6])
    wih_b, whh_b, b_b = lstm_dir(ks[7], ks[8], ks[9], ks[10])

    # Classifier: PyTorch weight (L, 2H) -> (2H, L); nonzero bias like nn.Linear.
    wc_pt = s * jax.random.normal(ks[11], (num_labels, 2 * lstm_hidden), jnp.float32)
    bc = s * jax.random.normal(ks[12], (1, num_labels), jnp.float32)

    return dict(
        embed=embed, wconv=wconv, bconv=bconv,
        wih=jnp.concatenate([wih_f, wih_b], axis=1),    # (F, 8H)
        bih=jnp.concatenate([b_f, b_b], axis=1),        # (1, 8H)
        whh_f=whh_f, whh_b=whh_b,
        wcls=jnp.transpose(wc_pt),                      # (2H, L)
        bcls=bc,
    )


@jax.jit
def forward(params, input_ids, attention_mask):
    # BERT stand-in (glue): masked embedding lookup -> last_hidden_state.
    # TODO(synk): full BERT encoder replaced by deterministic embedding stand-in.
    seq = params["embed"][input_ids]                                # (B, S, Hin)
    seq = seq * attention_mask[:, :, None].astype(seq.dtype)

    hin = seq.shape[-1]
    k = params["wconv"].shape[0] // hin
    pad = (k - 1) // 2
    xpad = jnp.pad(seq, ((0, 0), (pad, pad), (0, 0)))               # (B, S+K-1, Hin)

    # Fused conv + ReLU + BiLSTM + classifier in one Pallas kernel.
    return fused_head(xpad, params)                                 # (B, L)


if __name__ == "__main__":
    B, S = 2, 8
    VOCAB = 64
    HIDDEN = 32        # bert hidden_size (small synthetic)
    CNN_FILTERS = 32
    CNN_K = 3
    LSTM_H = 32
    NUM_LABELS = 4

    key = jax.random.PRNGKey(0)
    k_ids, k_params = jax.random.split(key)

    input_ids = jax.random.randint(k_ids, (B, S), 0, VOCAB, dtype=jnp.int32)
    attention_mask = jnp.ones((B, S), jnp.int32).at[1, -2:].set(0)

    params = init_params(k_params, VOCAB, HIDDEN, CNN_FILTERS, CNN_K,
                         LSTM_H, NUM_LABELS)

    logits = forward(params, input_ids, attention_mask)
    jax.block_until_ready(logits)
    assert logits.shape == (B, NUM_LABELS)
    print("KERNEL_OK")
</pallas_src>

<mosaic_0001>
module attributes {stable_mosaic.version = 11 : i64} {
  func.func @fused_conv_bilstm_cls_kernel(%arg0: memref<2x10x32xf32, #tpu.memory_space<vmem>>, %arg1: memref<96x32xf32, #tpu.memory_space<vmem>>, %arg2: memref<1x32xf32, #tpu.memory_space<vmem>>, %arg3: memref<32x256xf32, #tpu.memory_space<vmem>>, %arg4: memref<1x256xf32, #tpu.memory_space<vmem>>, %arg5: memref<32x128xf32, #tpu.memory_space<vmem>>, %arg6: memref<32x128xf32, #tpu.memory_space<vmem>>, %arg7: memref<64x4xf32, #tpu.memory_space<vmem>>, %arg8: memref<1x4xf32, #tpu.memory_space<vmem>>, %arg9: memref<2x4xf32, #tpu.memory_space<vmem>>) attributes {dimension_semantics = [], scalar_prefetch = 0 : i64, scratch_operands = 0 : i64, tpu.core_type = #tpu.core_type<tc>} {
    %c0 = arith.constant 0 : index
    %c0_0 = arith.constant 0 : index
    %c0_1 = arith.constant 0 : index
    %0 = vector.load %arg0[%c0, %c0_0, %c0_1] : memref<2x10x32xf32, #tpu.memory_space<vmem>>, vector<2x10x32xf32>
    %1 = vector.extract_strided_slice %0 {offsets = [0, 0, 0], sizes = [2, 8, 32], strides = [1, 1, 1]} : vector<2x10x32xf32> to vector<2x8x32xf32>
    %2 = vector.extract_strided_slice %0 {offsets = [0, 1, 0], sizes = [2, 8, 32], strides = [1, 1, 1]} : vector<2x10x32xf32> to vector<2x8x32xf32>
    %3 = vector.extract_strided_slice %0 {offsets = [0, 2, 0], sizes = [2, 8, 32], strides = [1, 1, 1]} : vector<2x10x32xf32> to vector<2x8x32xf32>
    %4 = tpu.concatenate %1, %2, %3 in 2 : vector<2x8x32xf32>, vector<2x8x32xf32>, vector<2x8x32xf32> -> vector<2x8x96xf32>
    %5 = vector.shape_cast %4 : vector<2x8x96xf32> to vector<16x96xf32>
    %c0_2 = arith.constant 0 : index
    %c0_3 = arith.constant 0 : index
    %6 = vector.load %arg1[%c0_2, %c0_3] : memref<96x32xf32, #tpu.memory_space<vmem>>, vector<96x32xf32>
    %cst = arith.constant dense<0.000000e+00> : vector<16x32xf32>
    %7 = tpu.matmul %5, %6, %cst {dimension_numbers = #tpu.dot_dimension_numbers<[1], [0], [0], [1], [0, 0, 1, 1], [], []>} : vector<16x96xf32>, vector<96x32xf32>, vector<16x32xf32> -> vector<16x32xf32>
    %c0_4 = arith.constant 0 : index
    %c0_5 = arith.constant 0 : index
    %8 = vector.load %arg2[%c0_4, %c0_5] : memref<1x32xf32, #tpu.memory_space<vmem>>, vector<1x32xf32>
    %9 = vector.broadcast %8 : vector<1x32xf32> to vector<16x32xf32>
    %10 = arith.addf %7, %9 : vector<16x32xf32>
    %cst_6 = arith.constant 0.000000e+00 : f32
    %11 = vector.broadcast %cst_6 : f32 to vector<16x32xf32>
    %12 = arith.maximumf %10, %11 : vector<16x32xf32>
    %c0_7 = arith.constant 0 : index
    %c0_8 = arith.constant 0 : index
    %13 = vector.load %arg3[%c0_7, %c0_8] : memref<32x256xf32, #tpu.memory_space<vmem>>, vector<32x256xf32>
    %cst_9 = arith.constant dense<0.000000e+00> : vector<16x256xf32>
    %14 = tpu.matmul %12, %13, %cst_9 {dimension_numbers = #tpu.dot_dimension_numbers<[1], [0], [0], [1], [0, 0, 1, 1], [], []>} : vector<16x32xf32>, vector<32x256xf32>, vector<16x256xf32> -> vector<16x256xf32>
    %c0_10 = arith.constant 0 : index
    %c0_11 = arith.constant 0 : index
    %15 = vector.load %arg4[%c0_10, %c0_11] : memref<1x256xf32, #tpu.memory_space<vmem>>, vector<1x256xf32>
    %16 = vector.broadcast %15 : vector<1x256xf32> to vector<16x256xf32>
    %17 = arith.addf %14, %16 : vector<16x256xf32>
    %18 = vector.shape_cast %17 : vector<16x256xf32> to vector<2x8x256xf32>
    %c0_12 = arith.constant 0 : index
    %c0_13 = arith.constant 0 : index
    %19 = vector.load %arg5[%c0_12, %c0_13] : memref<32x128xf32, #tpu.memory_space<vmem>>, vector<32x128xf32>
    %c0_14 = arith.constant 0 : index
    %c0_15 = arith.constant 0 : index
    %20 = vector.load %arg6[%c0_14, %c0_15] : memref<32x128xf32, #tpu.memory_space<vmem>>, vector<32x128xf32>
    %cst_16 = arith.constant 0.000000e+00 : f32
    %21 = vector.broadcast %cst_16 : f32 to vector<2x32xf32>
    %cst_17 = arith.constant 0.000000e+00 : f32
    %22 = vector.broadcast %cst_17 : f32 to vector<2x32xf32>
    %cst_18 = arith.constant 0.000000e+00 : f32
    %23 = vector.broadcast %cst_18 : f32 to vector<2x32xf32>
    %cst_19 = arith.constant 0.000000e+00 : f32
    %24 = vector.broadcast %cst_19 : f32 to vector<2x32xf32>
    %25 = vector.extract_strided_slice %18 {offsets = [0, 0, 0], sizes = [2, 1, 128], strides = [1, 1, 1]} : vector<2x8x256xf32> to vector<2x1x128xf32>
    %26 = vector.shape_cast %25 : vector<2x1x128xf32> to vector<2x128xf32>
    %cst_20 = arith.constant dense<0.000000e+00> : vector<2x128xf32>
    %27 = tpu.matmul %21, %19, %cst_20 {dimension_numbers = #tpu.dot_dimension_numbers<[1], [0], [0], [1], [0, 0, 1, 1], [], []>} : vector<2x32xf32>, vector<32x128xf32>, vector<2x128xf32> -> vector<2x128xf32>
    %28 = arith.addf %26, %27 : vector<2x128xf32>
    %29 = vector.extract_strided_slice %18 {offsets = [0, 7, 128], sizes = [2, 1, 128], strides = [1, 1, 1]} : vector<2x8x256xf32> to vector<2x1x128xf32>
    %30 = vector.shape_cast %29 : vector<2x1x128xf32> to vector<2x128xf32>
    %cst_21 = arith.constant dense<0.000000e+00> : vector<2x128xf32>
    %31 = tpu.matmul %23, %20, %cst_21 {dimension_numbers = #tpu.dot_dimension_numbers<[1], [0], [0], [1], [0, 0, 1, 1], [], []>} : vector<2x32xf32>, vector<32x128xf32>, vector<2x128xf32> -> vector<2x128xf32>
    %32 = arith.addf %30, %31 : vector<2x128xf32>
    %33 = vector.extract_strided_slice %28 {offsets = [0, 0], sizes = [2, 32], strides = [1, 1]} : vector<2x128xf32> to vector<2x32xf32>
    %34 = arith.negf %33 : vector<2x32xf32>
    %35 = math.exp %34 : vector<2x32xf32>
    %cst_22 = arith.constant 1.000000e+00 : f32
    %36 = vector.broadcast %cst_22 : f32 to vector<2x32xf32>
    %37 = arith.addf %36, %35 : vector<2x32xf32>
    %38 = arith.divf %36, %37 : vector<2x32xf32>
    %39 = vector.extract_strided_slice %28 {offsets = [0, 32], sizes = [2, 32], strides = [1, 1]} : vector<2x128xf32> to vector<2x32xf32>
    %40 = arith.negf %39 : vector<2x32xf32>
    %41 = math.exp %40 : vector<2x32xf32>
    %cst_23 = arith.constant 1.000000e+00 : f32
    %42 = vector.broadcast %cst_23 : f32 to vector<2x32xf32>
    %43 = arith.addf %42, %41 : vector<2x32xf32>
    %44 = arith.divf %42, %43 : vector<2x32xf32>
    %45 = vector.extract_strided_slice %28 {offsets = [0, 64], sizes = [2, 32], strides = [1, 1]} : vector<2x128xf32> to vector<2x32xf32>
    %46 = math.tanh %45 : vector<2x32xf32>
    %47 = vector.extract_strided_slice %28 {offsets = [0, 96], sizes = [2, 32], strides = [1, 1]} : vector<2x128xf32> to vector<2x32xf32>
    %48 = arith.negf %47 : vector<2x32xf32>
    %49 = math.exp %48 : vector<2x32xf32>
    %cst_24 = arith.constant 1.000000e+00 : f32
    %50 = vector.broadcast %cst_24 : f32 to vector<2x32xf32>
    %51 = arith.addf %50, %49 : vector<2x32xf32>
    %52 = arith.divf %50, %51 : vector<2x32xf32>
    %53 = arith.mulf %44, %22 : vector<2x32xf32>
    %54 = arith.mulf %38, %46 : vector<2x32xf32>
    %55 = arith.addf %53, %54 : vector<2x32xf32>
    %56 = math.tanh %55 : vector<2x32xf32>
    %57 = arith.mulf %52, %56 : vector<2x32xf32>
    %58 = vector.extract_strided_slice %32 {offsets = [0, 0], sizes = [2, 32], strides = [1, 1]} : vector<2x128xf32> to vector<2x32xf32>
    %59 = arith.negf %58 : vector<2x32xf32>
    %60 = math.exp %59 : vector<2x32xf32>
    %cst_25 = arith.constant 1.000000e+00 : f32
    %61 = vector.broadcast %cst_25 : f32 to vector<2x32xf32>
    %62 = arith.addf %61, %60 : vector<2x32xf32>
    %63 = arith.divf %61, %62 : vector<2x32xf32>
    %64 = vector.extract_strided_slice %32 {offsets = [0, 32], sizes = [2, 32], strides = [1, 1]} : vector<2x128xf32> to vector<2x32xf32>
    %65 = arith.negf %64 : vector<2x32xf32>
    %66 = math.exp %65 : vector<2x32xf32>
    %cst_26 = arith.constant 1.000000e+00 : f32
    %67 = vector.broadcast %cst_26 : f32 to vector<2x32xf32>
    %68 = arith.addf %67, %66 : vector<2x32xf32>
    %69 = arith.divf %67, %68 : vector<2x32xf32>
    %70 = vector.extract_strided_slice %32 {offsets = [0, 64], sizes = [2, 32], strides = [1, 1]} : vector<2x128xf32> to vector<2x32xf32>
    %71 = math.tanh %70 : vector<2x32xf32>
    %72 = vector.extract_strided_slice %32 {offsets = [0, 96], sizes = [2, 32], strides = [1, 1]} : vector<2x128xf32> to vector<2x32xf32>
    %73 = arith.negf %72 : vector<2x32xf32>
    %74 = math.exp %73 : vector<2x32xf32>
    %cst_27 = arith.constant 1.000000e+00 : f32
    %75 = vector.broadcast %cst_27 : f32 to vector<2x32xf32>
    %76 = arith.addf %75, %74 : vector<2x32xf32>
    %77 = arith.divf %75, %76 : vector<2x32xf32>
    %78 = arith.mulf %69, %24 : vector<2x32xf32>
    %79 = arith.mulf %63, %71 : vector<2x32xf32>
    %80 = arith.addf %78, %79 : vector<2x32xf32>
    %81 = math.tanh %80 : vector<2x32xf32>
    %82 = arith.mulf %77, %81 : vector<2x32xf32>
    %83 = vector.extract_strided_slice %18 {offsets = [0, 1, 0], sizes = [2, 1, 128], strides = [1, 1, 1]} : vector<2x8x256xf32> to vector<2x1x128xf32>
    %84 = vector.shape_cast %83 : vector<2x1x128xf32> to vector<2x128xf32>
    %cst_28 = arith.constant dense<0.000000e+00> : vector<2x128xf32>
    %85 = tpu.matmul %57, %19, %cst_28 {dimension_numbers = #tpu.dot_dimension_numbers<[1], [0], [0], [1], [0, 0, 1, 1], [], []>} : vector<2x32xf32>, vector<32x128xf32>, vector<2x128xf32> -> vector<2x128xf32>
    %86 = arith.addf %84, %85 : vector<2x128xf32>
    %87 = vector.extract_strided_slice %18 {offsets = [0, 6, 128], sizes = [2, 1, 128], strides = [1, 1, 1]} : vector<2x8x256xf32> to vector<2x1x128xf32>
    %88 = vector.shape_cast %87 : vector<2x1x128xf32> to vector<2x128xf32>
    %cst_29 = arith.constant dense<0.000000e+00> : vector<2x128xf32>
    %89 = tpu.matmul %82, %20, %cst_29 {dimension_numbers = #tpu.dot_dimension_numbers<[1], [0], [0], [1], [0, 0, 1, 1], [], []>} : vector<2x32xf32>, vector<32x128xf32>, vector<2x128xf32> -> vector<2x128xf32>
    %90 = arith.addf %88, %89 : vector<2x128xf32>
    %91 = vector.extract_strided_slice %86 {offsets = [0, 0], sizes = [2, 32], strides = [1, 1]} : vector<2x128xf32> to vector<2x32xf32>
    %92 = arith.negf %91 : vector<2x32xf32>
    %93 = math.exp %92 : vector<2x32xf32>
    %cst_30 = arith.constant 1.000000e+00 : f32
    %94 = vector.broadcast %cst_30 : f32 to vector<2x32xf32>
    %95 = arith.addf %94, %93 : vector<2x32xf32>
    %96 = arith.divf %94, %95 : vector<2x32xf32>
    %97 = vector.extract_strided_slice %86 {offsets = [0, 32], sizes = [2, 32], strides = [1, 1]} : vector<2x128xf32> to vector<2x32xf32>
    %98 = arith.negf %97 : vector<2x32xf32>
    %99 = math.exp %98 : vector<2x32xf32>
    %cst_31 = arith.constant 1.000000e+00 : f32
    %100 = vector.broadcast %cst_31 : f32 to vector<2x32xf32>
    %101 = arith.addf %100, %99 : vector<2x32xf32>
    %102 = arith.divf %100, %101 : vector<2x32xf32>
    %103 = vector.extract_strided_slice %86 {offsets = [0, 64], sizes = [2, 32], strides = [1, 1]} : vector<2x128xf32> to vector<2x32xf32>
    %104 = math.tanh %103 : vector<2x32xf32>
    %105 = vector.extract_strided_slice %86 {offsets = [0, 96], sizes = [2, 32], strides = [1, 1]} : vector<2x128xf32> to vector<2x32xf32>
    %106 = arith.negf %105 : vector<2x32xf32>
    %107 = math.exp %106 : vector<2x32xf32>
    %cst_32 = arith.constant 1.000000e+00 : f32
    %108 = vector.broadcast %cst_32 : f32 to vector<2x32xf32>
    %109 = arith.addf %108, %107 : vector<2x32xf32>
    %110 = arith.divf %108, %109 : vector<2x32xf32>
    %111 = arith.mulf %102, %55 : vector<2x32xf32>
    %112 = arith.mulf %96, %104 : vector<2x32xf32>
    %113 = arith.addf %111, %112 : vector<2x32xf32>
    %114 = math.tanh %113 : vector<2x32xf32>
    %115 = arith.mulf %110, %114 : vector<2x32xf32>
    %116 = vector.extract_strided_slice %90 {offsets = [0, 0], sizes = [2, 32], strides = [1, 1]} : vector<2x128xf32> to vector<2x32xf32>
    %117 = arith.negf %116 : vector<2x32xf32>
    %118 = math.exp %117 : vector<2x32xf32>
    %cst_33 = arith.constant 1.000000e+00 : f32
    %119 = vector.broadcast %cst_33 : f32 to vector<2x32xf32>
    %120 = arith.addf %119, %118 : vector<2x32xf32>
    %121 = arith.divf %119, %120 : vector<2x32xf32>
    %122 = vector.extract_strided_slice %90 {offsets = [0, 32], sizes = [2, 32], strides = [1, 1]} : vector<2x128xf32> to vector<2x32xf32>
    %123 = arith.negf %122 : vector<2x32xf32>
    %124 = math.exp %123 : vector<2x32xf32>
    %cst_34 = arith.constant 1.000000e+00 : f32
    %125 = vector.broadcast %cst_34 : f32 to vector<2x32xf32>
    %126 = arith.addf %125, %124 : vector<2x32xf32>
    %127 = arith.divf %125, %126 : vector<2x32xf32>
    %128 = vector.extract_strided_slice %90 {offsets = [0, 64], sizes = [2, 32], strides = [1, 1]} : vector<2x128xf32> to vector<2x32xf32>
    %129 = math.tanh %128 : vector<2x32xf32>
    %130 = vector.extract_strided_slice %90 {offsets = [0, 96], sizes = [2, 32], strides = [1, 1]} : vector<2x128xf32> to vector<2x32xf32>
    %131 = arith.negf %130 : vector<2x32xf32>
    %132 = math.exp %131 : vector<2x32xf32>
    %cst_35 = arith.constant 1.000000e+00 : f32
    %133 = vector.broadcast %cst_35 : f32 to vector<2x32xf32>
    %134 = arith.addf %133, %132 : vector<2x32xf32>
    %135 = arith.divf %133, %134 : vector<2x32xf32>
    %136 = arith.mulf %127, %80 : vector<2x32xf32>
    %137 = arith.mulf %121, %129 : vector<2x32xf32>
    %138 = arith.addf %136, %137 : vector<2x32xf32>
    %139 = math.tanh %138 : vector<2x32xf32>
    %140 = arith.mulf %135, %139 : vector<2x32xf32>
    %141 = vector.extract_strided_slice %18 {offsets = [0, 2, 0], sizes = [2, 1, 128], strides = [1, 1, 1]} : vector<2x8x256xf32> to vector<2x1x128xf32>
    %142 = vector.shape_cast %141 : vector<2x1x128xf32> to vector<2x128xf32>
    %cst_36 = arith.constant dense<0.000000e+00> : vector<2x128xf32>
    %143 = tpu.matmul %115, %19, %cst_36 {dimension_numbers = #tpu.dot_dimension_numbers<[1], [0], [0], [1], [0, 0, 1, 1], [], []>} : vector<2x32xf32>, vector<32x128xf32>, vector<2x128xf32> -> vector<2x128xf32>
    %144 = arith.addf %142, %143 : vector<2x128xf32>
    %145 = vector.extract_strided_slice %18 {offsets = [0, 5, 128], sizes = [2, 1, 128], strides = [1, 1, 1]} : vector<2x8x256xf32> to vector<2x1x128xf32>
    %146 = vector.shape_cast %145 : vector<2x1x128xf32> to vector<2x128xf32>
    %cst_37 = arith.constant dense<0.000000e+00> : vector<2x128xf32>
    %147 = tpu.matmul %140, %20, %cst_37 {dimension_numbers = #tpu.dot_dimension_numbers<[1], [0], [0], [1], [0, 0, 1, 1], [], []>} : vector<2x32xf32>, vector<32x128xf32>, vector<2x128xf32> -> vector<2x128xf32>
    %148 = arith.addf %146, %147 : vector<2x128xf32>
    %149 = vector.extract_strided_slice %144 {offsets = [0, 0], sizes = [2, 32], strides = [1, 1]} : vector<2x128xf32> to vector<2x32xf32>
    %150 = arith.negf %149 : vector<2x32xf32>
    %151 = math.exp %150 : vector<2x32xf32>
    %cst_38 = arith.constant 1.000000e+00 : f32
    %152 = vector.broadcast %cst_38 : f32 to vector<2x32xf32>
    %153 = arith.addf %152, %151 : vector<2x32xf32>
    %154 = arith.divf %152, %153 : vector<2x32xf32>
    %155 = vector.extract_strided_slice %144 {offsets = [0, 32], sizes = [2, 32], strides = [1, 1]} : vector<2x128xf32> to vector<2x32xf32>
    %156 = arith.negf %155 : vector<2x32xf32>
    %157 = math.exp %156 : vector<2x32xf32>
    %cst_39 = arith.constant 1.000000e+00 : f32
    %158 = vector.broadcast %cst_39 : f32 to vector<2x32xf32>
    %159 = arith.addf %158, %157 : vector<2x32xf32>
    %160 = arith.divf %158, %159 : vector<2x32xf32>
    %161 = vector.extract_strided_slice %144 {offsets = [0, 64], sizes = [2, 32], strides = [1, 1]} : vector<2x128xf32> to vector<2x32xf32>
    %162 = math.tanh %161 : vector<2x32xf32>
    %163 = vector.extract_strided_slice %144 {offsets = [0, 96], sizes = [2, 32], strides = [1, 1]} : vector<2x128xf32> to vector<2x32xf32>
    %164 = arith.negf %163 : vector<2x32xf32>
    %165 = math.exp %164 : vector<2x32xf32>
    %cst_40 = arith.constant 1.000000e+00 : f32
    %166 = vector.broadcast %cst_40 : f32 to vector<2x32xf32>
    %167 = arith.addf %166, %165 : vector<2x32xf32>
    %168 = arith.divf %166, %167 : vector<2x32xf32>
    %169 = arith.mulf %160, %113 : vector<2x32xf32>
    %170 = arith.mulf %154, %162 : vector<2x32xf32>
    %171 = arith.addf %169, %170 : vector<2x32xf32>
    %172 = math.tanh %171 : vector<2x32xf32>
    %173 = arith.mulf %168, %172 : vector<2x32xf32>
    %174 = vector.extract_strided_slice %148 {offsets = [0, 0], sizes = [2, 32], strides = [1, 1]} : vector<2x128xf32> to vector<2x32xf32>
    %175 = arith.negf %174 : vector<2x32xf32>
    %176 = math.exp %175 : vector<2x32xf32>
    %cst_41 = arith.constant 1.000000e+00 : f32
    %177 = vector.broadcast %cst_41 : f32 to vector<2x32xf32>
    %178 = arith.addf %177, %176 : vector<2x32xf32>
    %179 = arith.divf %177, %178 : vector<2x32xf32>
    %180 = vector.extract_strided_slice %148 {offsets = [0, 32], sizes = [2, 32], strides = [1, 1]} : vector<2x128xf32> to vector<2x32xf32>
    %181 = arith.negf %180 : vector<2x32xf32>
    %182 = math.exp %181 : vector<2x32xf32>
    %cst_42 = arith.constant 1.000000e+00 : f32
    %183 = vector.broadcast %cst_42 : f32 to vector<2x32xf32>
    %184 = arith.addf %183, %182 : vector<2x32xf32>
    %185 = arith.divf %183, %184 : vector<2x32xf32>
    %186 = vector.extract_strided_slice %148 {offsets = [0, 64], sizes = [2, 32], strides = [1, 1]} : vector<2x128xf32> to vector<2x32xf32>
    %187 = math.tanh %186 : vector<2x32xf32>
    %188 = vector.extract_strided_slice %148 {offsets = [0, 96], sizes = [2, 32], strides = [1, 1]} : vector<2x128xf32> to vector<2x32xf32>
    %189 = arith.negf %188 : vector<2x32xf32>
    %190 = math.exp %189 : vector<2x32xf32>
    %cst_43 = arith.constant 1.000000e+00 : f32
    %191 = vector.broadcast %cst_43 : f32 to vector<2x32xf32>
    %192 = arith.addf %191, %190 : vector<2x32xf32>
    %193 = arith.divf %191, %192 : vector<2x32xf32>
    %194 = arith.mulf %185, %138 : vector<2x32xf32>
    %195 = arith.mulf %179, %187 : vector<2x32xf32>
    %196 = arith.addf %194, %195 : vector<2x32xf32>
    %197 = math.tanh %196 : vector<2x32xf32>
    %198 = arith.mulf %193, %197 : vector<2x32xf32>
    %199 = vector.extract_strided_slice %18 {offsets = [0, 3, 0], sizes = [2, 1, 128], strides = [1, 1, 1]} : vector<2x8x256xf32> to vector<2x1x128xf32>
    %200 = vector.shape_cast %199 : vector<2x1x128xf32> to vector<2x128xf32>
    %cst_44 = arith.constant dense<0.000000e+00> : vector<2x128xf32>
    %201 = tpu.matmul %173, %19, %cst_44 {dimension_numbers = #tpu.dot_dimension_numbers<[1], [0], [0], [1], [0, 0, 1, 1], [], []>} : vector<2x32xf32>, vector<32x128xf32>, vector<2x128xf32> -> vector<2x128xf32>
    %202 = arith.addf %200, %201 : vector<2x128xf32>
    %203 = vector.extract_strided_slice %18 {offsets = [0, 4, 128], sizes = [2, 1, 128], strides = [1, 1, 1]} : vector<2x8x256xf32> to vector<2x1x128xf32>
    %204 = vector.shape_cast %203 : vector<2x1x128xf32> to vector<2x128xf32>
    %cst_45 = arith.constant dense<0.000000e+00> : vector<2x128xf32>
    %205 = tpu.matmul %198, %20, %cst_45 {dimension_numbers = #tpu.dot_dimension_numbers<[1], [0], [0], [1], [0, 0, 1, 1], [], []>} : vector<2x32xf32>, vector<32x128xf32>, vector<2x128xf32> -> vector<2x128xf32>
    %206 = arith.addf %204, %205 : vector<2x128xf32>
    %207 = vector.extract_strided_slice %202 {offsets = [0, 0], sizes = [2, 32], strides = [1, 1]} : vector<2x128xf32> to vector<2x32xf32>
    %208 = arith.negf %207 : vector<2x32xf32>
    %209 = math.exp %208 : vector<2x32xf32>
    %cst_46 = arith.constant 1.000000e+00 : f32
    %210 = vector.broadcast %cst_46 : f32 to vector<2x32xf32>
    %211 = arith.addf %210, %209 : vector<2x32xf32>
    %212 = arith.divf %210, %211 : vector<2x32xf32>
    %213 = vector.extract_strided_slice %202 {offsets = [0, 32], sizes = [2, 32], strides = [1, 1]} : vector<2x128xf32> to vector<2x32xf32>
    %214 = arith.negf %213 : vector<2x32xf32>
    %215 = math.exp %214 : vector<2x32xf32>
    %cst_47 = arith.constant 1.000000e+00 : f32
    %216 = vector.broadcast %cst_47 : f32 to vector<2x32xf32>
    %217 = arith.addf %216, %215 : vector<2x32xf32>
    %218 = arith.divf %216, %217 : vector<2x32xf32>
    %219 = vector.extract_strided_slice %202 {offsets = [0, 64], sizes = [2, 32], strides = [1, 1]} : vector<2x128xf32> to vector<2x32xf32>
    %220 = math.tanh %219 : vector<2x32xf32>
    %221 = vector.extract_strided_slice %202 {offsets = [0, 96], sizes = [2, 32], strides = [1, 1]} : vector<2x128xf32> to vector<2x32xf32>
    %222 = arith.negf %221 : vector<2x32xf32>
    %223 = math.exp %222 : vector<2x32xf32>
    %cst_48 = arith.constant 1.000000e+00 : f32
    %224 = vector.broadcast %cst_48 : f32 to vector<2x32xf32>
    %225 = arith.addf %224, %223 : vector<2x32xf32>
    %226 = arith.divf %224, %225 : vector<2x32xf32>
    %227 = arith.mulf %218, %171 : vector<2x32xf32>
    %228 = arith.mulf %212, %220 : vector<2x32xf32>
    %229 = arith.addf %227, %228 : vector<2x32xf32>
    %230 = math.tanh %229 : vector<2x32xf32>
    %231 = arith.mulf %226, %230 : vector<2x32xf32>
    %232 = vector.extract_strided_slice %206 {offsets = [0, 0], sizes = [2, 32], strides = [1, 1]} : vector<2x128xf32> to vector<2x32xf32>
    %233 = arith.negf %232 : vector<2x32xf32>
    %234 = math.exp %233 : vector<2x32xf32>
    %cst_49 = arith.constant 1.000000e+00 : f32
    %235 = vector.broadcast %cst_49 : f32 to vector<2x32xf32>
    %236 = arith.addf %235, %234 : vector<2x32xf32>
    %237 = arith.divf %235, %236 : vector<2x32xf32>
    %238 = vector.extract_strided_slice %206 {offsets = [0, 32], sizes = [2, 32], strides = [1, 1]} : vector<2x128xf32> to vector<2x32xf32>
    %239 = arith.negf %238 : vector<2x32xf32>
    %240 = math.exp %239 : vector<2x32xf32>
    %cst_50 = arith.constant 1.000000e+00 : f32
    %241 = vector.broadcast %cst_50 : f32 to vector<2x32xf32>
    %242 = arith.addf %241, %240 : vector<2x32xf32>
    %243 = arith.divf %241, %242 : vector<2x32xf32>
    %244 = vector.extract_strided_slice %206 {offsets = [0, 64], sizes = [2, 32], strides = [1, 1]} : vector<2x128xf32> to vector<2x32xf32>
    %245 = math.tanh %244 : vector<2x32xf32>
    %246 = vector.extract_strided_slice %206 {offsets = [0, 96], sizes = [2, 32], strides = [1, 1]} : vector<2x128xf32> to vector<2x32xf32>
    %247 = arith.negf %246 : vector<2x32xf32>
    %248 = math.exp %247 : vector<2x32xf32>
    %cst_51 = arith.constant 1.000000e+00 : f32
    %249 = vector.broadcast %cst_51 : f32 to vector<2x32xf32>
    %250 = arith.addf %249, %248 : vector<2x32xf32>
    %251 = arith.divf %249, %250 : vector<2x32xf32>
    %252 = arith.mulf %243, %196 : vector<2x32xf32>
    %253 = arith.mulf %237, %245 : vector<2x32xf32>
    %254 = arith.addf %252, %253 : vector<2x32xf32>
    %255 = math.tanh %254 : vector<2x32xf32>
    %256 = arith.mulf %251, %255 : vector<2x32xf32>
    %257 = vector.extract_strided_slice %18 {offsets = [0, 4, 0], sizes = [2, 1, 128], strides = [1, 1, 1]} : vector<2x8x256xf32> to vector<2x1x128xf32>
    %258 = vector.shape_cast %257 : vector<2x1x128xf32> to vector<2x128xf32>
    %cst_52 = arith.constant dense<0.000000e+00> : vector<2x128xf32>
    %259 = tpu.matmul %231, %19, %cst_52 {dimension_numbers = #tpu.dot_dimension_numbers<[1], [0], [0], [1], [0, 0, 1, 1], [], []>} : vector<2x32xf32>, vector<32x128xf32>, vector<2x128xf32> -> vector<2x128xf32>
    %260 = arith.addf %258, %259 : vector<2x128xf32>
    %261 = vector.extract_strided_slice %18 {offsets = [0, 3, 128], sizes = [2, 1, 128], strides = [1, 1, 1]} : vector<2x8x256xf32> to vector<2x1x128xf32>
    %262 = vector.shape_cast %261 : vector<2x1x128xf32> to vector<2x128xf32>
    %cst_53 = arith.constant dense<0.000000e+00> : vector<2x128xf32>
    %263 = tpu.matmul %256, %20, %cst_53 {dimension_numbers = #tpu.dot_dimension_numbers<[1], [0], [0], [1], [0, 0, 1, 1], [], []>} : vector<2x32xf32>, vector<32x128xf32>, vector<2x128xf32> -> vector<2x128xf32>
    %264 = arith.addf %262, %263 : vector<2x128xf32>
    %265 = vector.extract_strided_slice %260 {offsets = [0, 0], sizes = [2, 32], strides = [1, 1]} : vector<2x128xf32> to vector<2x32xf32>
    %266 = arith.negf %265 : vector<2x32xf32>
    %267 = math.exp %266 : vector<2x32xf32>
    %cst_54 = arith.constant 1.000000e+00 : f32
    %268 = vector.broadcast %cst_54 : f32 to vector<2x32xf32>
    %269 = arith.addf %268, %267 : vector<2x32xf32>
    %270 = arith.divf %268, %269 : vector<2x32xf32>
    %271 = vector.extract_strided_slice %260 {offsets = [0, 32], sizes = [2, 32], strides = [1, 1]} : vector<2x128xf32> to vector<2x32xf32>
    %272 = arith.negf %271 : vector<2x32xf32>
    %273 = math.exp %272 : vector<2x32xf32>
    %cst_55 = arith.constant 1.000000e+00 : f32
    %274 = vector.broadcast %cst_55 : f32 to vector<2x32xf32>
    %275 = arith.addf %274, %273 : vector<2x32xf32>
    %276 = arith.divf %274, %275 : vector<2x32xf32>
    %277 = vector.extract_strided_slice %260 {offsets = [0, 64], sizes = [2, 32], strides = [1, 1]} : vector<2x128xf32> to vector<2x32xf32>
    %278 = math.tanh %277 : vector<2x32xf32>
    %279 = vector.extract_strided_slice %260 {offsets = [0, 96], sizes = [2, 32], strides = [1, 1]} : vector<2x128xf32> to vector<2x32xf32>
    %280 = arith.negf %279 : vector<2x32xf32>
    %281 = math.exp %280 : vector<2x32xf32>
    %cst_56 = arith.constant 1.000000e+00 : f32
    %282 = vector.broadcast %cst_56 : f32 to vector<2x32xf32>
    %283 = arith.addf %282, %281 : vector<2x32xf32>
    %284 = arith.divf %282, %283 : vector<2x32xf32>
    %285 = arith.mulf %276, %229 : vector<2x32xf32>
    %286 = arith.mulf %270, %278 : vector<2x32xf32>
    %287 = arith.addf %285, %286 : vector<2x32xf32>
    %288 = math.tanh %287 : vector<2x32xf32>
    %289 = arith.mulf %284, %288 : vector<2x32xf32>
    %290 = vector.extract_strided_slice %264 {offsets = [0, 0], sizes = [2, 32], strides = [1, 1]} : vector<2x128xf32> to vector<2x32xf32>
    %291 = arith.negf %290 : vector<2x32xf32>
    %292 = math.exp %291 : vector<2x32xf32>
    %cst_57 = arith.constant 1.000000e+00 : f32
    %293 = vector.broadcast %cst_57 : f32 to vector<2x32xf32>
    %294 = arith.addf %293, %292 : vector<2x32xf32>
    %295 = arith.divf %293, %294 : vector<2x32xf32>
    %296 = vector.extract_strided_slice %264 {offsets = [0, 32], sizes = [2, 32], strides = [1, 1]} : vector<2x128xf32> to vector<2x32xf32>
    %297 = arith.negf %296 : vector<2x32xf32>
    %298 = math.exp %297 : vector<2x32xf32>
    %cst_58 = arith.constant 1.000000e+00 : f32
    %299 = vector.broadcast %cst_58 : f32 to vector<2x32xf32>
    %300 = arith.addf %299, %298 : vector<2x32xf32>
    %301 = arith.divf %299, %300 : vector<2x32xf32>
    %302 = vector.extract_strided_slice %264 {offsets = [0, 64], sizes = [2, 32], strides = [1, 1]} : vector<2x128xf32> to vector<2x32xf32>
    %303 = math.tanh %302 : vector<2x32xf32>
    %304 = vector.extract_strided_slice %264 {offsets = [0, 96], sizes = [2, 32], strides = [1, 1]} : vector<2x128xf32> to vector<2x32xf32>
    %305 = arith.negf %304 : vector<2x32xf32>
    %306 = math.exp %305 : vector<2x32xf32>
    %cst_59 = arith.constant 1.000000e+00 : f32
    %307 = vector.broadcast %cst_59 : f32 to vector<2x32xf32>
    %308 = arith.addf %307, %306 : vector<2x32xf32>
    %309 = arith.divf %307, %308 : vector<2x32xf32>
    %310 = arith.mulf %301, %254 : vector<2x32xf32>
    %311 = arith.mulf %295, %303 : vector<2x32xf32>
    %312 = arith.addf %310, %311 : vector<2x32xf32>
    %313 = math.tanh %312 : vector<2x32xf32>
    %314 = arith.mulf %309, %313 : vector<2x32xf32>
    %315 = vector.extract_strided_slice %18 {offsets = [0, 5, 0], sizes = [2, 1, 128], strides = [1, 1, 1]} : vector<2x8x256xf32> to vector<2x1x128xf32>
    %316 = vector.shape_cast %315 : vector<2x1x128xf32> to vector<2x128xf32>
    %cst_60 = arith.constant dense<0.000000e+00> : vector<2x128xf32>
    %317 = tpu.matmul %289, %19, %cst_60 {dimension_numbers = #tpu.dot_dimension_numbers<[1], [0], [0], [1], [0, 0, 1, 1], [], []>} : vector<2x32xf32>, vector<32x128xf32>, vector<2x128xf32> -> vector<2x128xf32>
    %318 = arith.addf %316, %317 : vector<2x128xf32>
    %319 = vector.extract_strided_slice %18 {offsets = [0, 2, 128], sizes = [2, 1, 128], strides = [1, 1, 1]} : vector<2x8x256xf32> to vector<2x1x128xf32>
    %320 = vector.shape_cast %319 : vector<2x1x128xf32> to vector<2x128xf32>
    %cst_61 = arith.constant dense<0.000000e+00> : vector<2x128xf32>
    %321 = tpu.matmul %314, %20, %cst_61 {dimension_numbers = #tpu.dot_dimension_numbers<[1], [0], [0], [1], [0, 0, 1, 1], [], []>} : vector<2x32xf32>, vector<32x128xf32>, vector<2x128xf32> -> vector<2x128xf32>
    %322 = arith.addf %320, %321 : vector<2x128xf32>
    %323 = vector.extract_strided_slice %318 {offsets = [0, 0], sizes = [2, 32], strides = [1, 1]} : vector<2x128xf32> to vector<2x32xf32>
    %324 = arith.negf %323 : vector<2x32xf32>
    %325 = math.exp %324 : vector<2x32xf32>
    %cst_62 = arith.constant 1.000000e+00 : f32
    %326 = vector.broadcast %cst_62 : f32 to vector<2x32xf32>
    %327 = arith.addf %326, %325 : vector<2x32xf32>
    %328 = arith.divf %326, %327 : vector<2x32xf32>
    %329 = vector.extract_strided_slice %318 {offsets = [0, 32], sizes = [2, 32], strides = [1, 1]} : vector<2x128xf32> to vector<2x32xf32>
    %330 = arith.negf %329 : vector<2x32xf32>
    %331 = math.exp %330 : vector<2x32xf32>
    %cst_63 = arith.constant 1.000000e+00 : f32
    %332 = vector.broadcast %cst_63 : f32 to vector<2x32xf32>
    %333 = arith.addf %332, %331 : vector<2x32xf32>
    %334 = arith.divf %332, %333 : vector<2x32xf32>
    %335 = vector.extract_strided_slice %318 {offsets = [0, 64], sizes = [2, 32], strides = [1, 1]} : vector<2x128xf32> to vector<2x32xf32>
    %336 = math.tanh %335 : vector<2x32xf32>
    %337 = vector.extract_strided_slice %318 {offsets = [0, 96], sizes = [2, 32], strides = [1, 1]} : vector<2x128xf32> to vector<2x32xf32>
    %338 = arith.negf %337 : vector<2x32xf32>
    %339 = math.exp %338 : vector<2x32xf32>
    %cst_64 = arith.constant 1.000000e+00 : f32
    %340 = vector.broadcast %cst_64 : f32 to vector<2x32xf32>
    %341 = arith.addf %340, %339 : vector<2x32xf32>
    %342 = arith.divf %340, %341 : vector<2x32xf32>
    %343 = arith.mulf %334, %287 : vector<2x32xf32>
    %344 = arith.mulf %328, %336 : vector<2x32xf32>
    %345 = arith.addf %343, %344 : vector<2x32xf32>
    %346 = math.tanh %345 : vector<2x32xf32>
    %347 = arith.mulf %342, %346 : vector<2x32xf32>
    %348 = vector.extract_strided_slice %322 {offsets = [0, 0], sizes = [2, 32], strides = [1, 1]} : vector<2x128xf32> to vector<2x32xf32>
    %349 = arith.negf %348 : vector<2x32xf32>
    %350 = math.exp %349 : vector<2x32xf32>
    %cst_65 = arith.constant 1.000000e+00 : f32
    %351 = vector.broadcast %cst_65 : f32 to vector<2x32xf32>
    %352 = arith.addf %351, %350 : vector<2x32xf32>
    %353 = arith.divf %351, %352 : vector<2x32xf32>
    %354 = vector.extract_strided_slice %322 {offsets = [0, 32], sizes = [2, 32], strides = [1, 1]} : vector<2x128xf32> to vector<2x32xf32>
    %355 = arith.negf %354 : vector<2x32xf32>
    %356 = math.exp %355 : vector<2x32xf32>
    %cst_66 = arith.constant 1.000000e+00 : f32
    %357 = vector.broadcast %cst_66 : f32 to vector<2x32xf32>
    %358 = arith.addf %357, %356 : vector<2x32xf32>
    %359 = arith.divf %357, %358 : vector<2x32xf32>
    %360 = vector.extract_strided_slice %322 {offsets = [0, 64], sizes = [2, 32], strides = [1, 1]} : vector<2x128xf32> to vector<2x32xf32>
    %361 = math.tanh %360 : vector<2x32xf32>
    %362 = vector.extract_strided_slice %322 {offsets = [0, 96], sizes = [2, 32], strides = [1, 1]} : vector<2x128xf32> to vector<2x32xf32>
    %363 = arith.negf %362 : vector<2x32xf32>
    %364 = math.exp %363 : vector<2x32xf32>
    %cst_67 = arith.constant 1.000000e+00 : f32
    %365 = vector.broadcast %cst_67 : f32 to vector<2x32xf32>
    %366 = arith.addf %365, %364 : vector<2x32xf32>
    %367 = arith.divf %365, %366 : vector<2x32xf32>
    %368 = arith.mulf %359, %312 : vector<2x32xf32>
    %369 = arith.mulf %353, %361 : vector<2x32xf32>
    %370 = arith.addf %368, %369 : vector<2x32xf32>
    %371 = math.tanh %370 : vector<2x32xf32>
    %372 = arith.mulf %367, %371 : vector<2x32xf32>
    %373 = vector.extract_strided_slice %18 {offsets = [0, 6, 0], sizes = [2, 1, 128], strides = [1, 1, 1]} : vector<2x8x256xf32> to vector<2x1x128xf32>
    %374 = vector.shape_cast %373 : vector<2x1x128xf32> to vector<2x128xf32>
    %cst_68 = arith.constant dense<0.000000e+00> : vector<2x128xf32>
    %375 = tpu.matmul %347, %19, %cst_68 {dimension_numbers = #tpu.dot_dimension_numbers<[1], [0], [0], [1], [0, 0, 1, 1], [], []>} : vector<2x32xf32>, vector<32x128xf32>, vector<2x128xf32> -> vector<2x128xf32>
    %376 = arith.addf %374, %375 : vector<2x128xf32>
    %377 = vector.extract_strided_slice %18 {offsets = [0, 1, 128], sizes = [2, 1, 128], strides = [1, 1, 1]} : vector<2x8x256xf32> to vector<2x1x128xf32>
    %378 = vector.shape_cast %377 : vector<2x1x128xf32> to vector<2x128xf32>
    %cst_69 = arith.constant dense<0.000000e+00> : vector<2x128xf32>
    %379 = tpu.matmul %372, %20, %cst_69 {dimension_numbers = #tpu.dot_dimension_numbers<[1], [0], [0], [1], [0, 0, 1, 1], [], []>} : vector<2x32xf32>, vector<32x128xf32>, vector<2x128xf32> -> vector<2x128xf32>
    %380 = arith.addf %378, %379 : vector<2x128xf32>
    %381 = vector.extract_strided_slice %376 {offsets = [0, 0], sizes = [2, 32], strides = [1, 1]} : vector<2x128xf32> to vector<2x32xf32>
    %382 = arith.negf %381 : vector<2x32xf32>
    %383 = math.exp %382 : vector<2x32xf32>
    %cst_70 = arith.constant 1.000000e+00 : f32
    %384 = vector.broadcast %cst_70 : f32 to vector<2x32xf32>
    %385 = arith.addf %384, %383 : vector<2x32xf32>
    %386 = arith.divf %384, %385 : vector<2x32xf32>
    %387 = vector.extract_strided_slice %376 {offsets = [0, 32], sizes = [2, 32], strides = [1, 1]} : vector<2x128xf32> to vector<2x32xf32>
    %388 = arith.negf %387 : vector<2x32xf32>
    %389 = math.exp %388 : vector<2x32xf32>
    %cst_71 = arith.constant 1.000000e+00 : f32
    %390 = vector.broadcast %cst_71 : f32 to vector<2x32xf32>
    %391 = arith.addf %390, %389 : vector<2x32xf32>
    %392 = arith.divf %390, %391 : vector<2x32xf32>
    %393 = vector.extract_strided_slice %376 {offsets = [0, 64], sizes = [2, 32], strides = [1, 1]} : vector<2x128xf32> to vector<2x32xf32>
    %394 = math.tanh %393 : vector<2x32xf32>
    %395 = vector.extract_strided_slice %376 {offsets = [0, 96], sizes = [2, 32], strides = [1, 1]} : vector<2x128xf32> to vector<2x32xf32>
    %396 = arith.negf %395 : vector<2x32xf32>
    %397 = math.exp %396 : vector<2x32xf32>
    %cst_72 = arith.constant 1.000000e+00 : f32
    %398 = vector.broadcast %cst_72 : f32 to vector<2x32xf32>
    %399 = arith.addf %398, %397 : vector<2x32xf32>
    %400 = arith.divf %398, %399 : vector<2x32xf32>
    %401 = arith.mulf %392, %345 : vector<2x32xf32>
    %402 = arith.mulf %386, %394 : vector<2x32xf32>
    %403 = arith.addf %401, %402 : vector<2x32xf32>
    %404 = math.tanh %403 : vector<2x32xf32>
    %405 = arith.mulf %400, %404 : vector<2x32xf32>
    %406 = vector.extract_strided_slice %380 {offsets = [0, 0], sizes = [2, 32], strides = [1, 1]} : vector<2x128xf32> to vector<2x32xf32>
    %407 = arith.negf %406 : vector<2x32xf32>
    %408 = math.exp %407 : vector<2x32xf32>
    %cst_73 = arith.constant 1.000000e+00 : f32
    %409 = vector.broadcast %cst_73 : f32 to vector<2x32xf32>
    %410 = arith.addf %409, %408 : vector<2x32xf32>
    %411 = arith.divf %409, %410 : vector<2x32xf32>
    %412 = vector.extract_strided_slice %380 {offsets = [0, 32], sizes = [2, 32], strides = [1, 1]} : vector<2x128xf32> to vector<2x32xf32>
    %413 = arith.negf %412 : vector<2x32xf32>
    %414 = math.exp %413 : vector<2x32xf32>
    %cst_74 = arith.constant 1.000000e+00 : f32
    %415 = vector.broadcast %cst_74 : f32 to vector<2x32xf32>
    %416 = arith.addf %415, %414 : vector<2x32xf32>
    %417 = arith.divf %415, %416 : vector<2x32xf32>
    %418 = vector.extract_strided_slice %380 {offsets = [0, 64], sizes = [2, 32], strides = [1, 1]} : vector<2x128xf32> to vector<2x32xf32>
    %419 = math.tanh %418 : vector<2x32xf32>
    %420 = vector.extract_strided_slice %380 {offsets = [0, 96], sizes = [2, 32], strides = [1, 1]} : vector<2x128xf32> to vector<2x32xf32>
    %421 = arith.negf %420 : vector<2x32xf32>
    %422 = math.exp %421 : vector<2x32xf32>
    %cst_75 = arith.constant 1.000000e+00 : f32
    %423 = vector.broadcast %cst_75 : f32 to vector<2x32xf32>
    %424 = arith.addf %423, %422 : vector<2x32xf32>
    %425 = arith.divf %423, %424 : vector<2x32xf32>
    %426 = arith.mulf %417, %370 : vector<2x32xf32>
    %427 = arith.mulf %411, %419 : vector<2x32xf32>
    %428 = arith.addf %426, %427 : vector<2x32xf32>
    %429 = math.tanh %428 : vector<2x32xf32>
    %430 = arith.mulf %425, %429 : vector<2x32xf32>
    %431 = vector.extract_strided_slice %18 {offsets = [0, 7, 0], sizes = [2, 1, 128], strides = [1, 1, 1]} : vector<2x8x256xf32> to vector<2x1x128xf32>
    %432 = vector.shape_cast %431 : vector<2x1x128xf32> to vector<2x128xf32>
    %cst_76 = arith.constant dense<0.000000e+00> : vector<2x128xf32>
    %433 = tpu.matmul %405, %19, %cst_76 {dimension_numbers = #tpu.dot_dimension_numbers<[1], [0], [0], [1], [0, 0, 1, 1], [], []>} : vector<2x32xf32>, vector<32x128xf32>, vector<2x128xf32> -> vector<2x128xf32>
    %434 = arith.addf %432, %433 : vector<2x128xf32>
    %435 = vector.extract_strided_slice %18 {offsets = [0, 0, 128], sizes = [2, 1, 128], strides = [1, 1, 1]} : vector<2x8x256xf32> to vector<2x1x128xf32>
    %436 = vector.shape_cast %435 : vector<2x1x128xf32> to vector<2x128xf32>
    %cst_77 = arith.constant dense<0.000000e+00> : vector<2x128xf32>
    %437 = tpu.matmul %430, %20, %cst_77 {dimension_numbers = #tpu.dot_dimension_numbers<[1], [0], [0], [1], [0, 0, 1, 1], [], []>} : vector<2x32xf32>, vector<32x128xf32>, vector<2x128xf32> -> vector<2x128xf32>
    %438 = arith.addf %436, %437 : vector<2x128xf32>
    %439 = vector.extract_strided_slice %434 {offsets = [0, 0], sizes = [2, 32], strides = [1, 1]} : vector<2x128xf32> to vector<2x32xf32>
    %440 = arith.negf %439 : vector<2x32xf32>
    %441 = math.exp %440 : vector<2x32xf32>
    %cst_78 = arith.constant 1.000000e+00 : f32
    %442 = vector.broadcast %cst_78 : f32 to vector<2x32xf32>
    %443 = arith.addf %442, %441 : vector<2x32xf32>
    %444 = arith.divf %442, %443 : vector<2x32xf32>
    %445 = vector.extract_strided_slice %434 {offsets = [0, 32], sizes = [2, 32], strides = [1, 1]} : vector<2x128xf32> to vector<2x32xf32>
    %446 = arith.negf %445 : vector<2x32xf32>
    %447 = math.exp %446 : vector<2x32xf32>
    %cst_79 = arith.constant 1.000000e+00 : f32
    %448 = vector.broadcast %cst_79 : f32 to vector<2x32xf32>
    %449 = arith.addf %448, %447 : vector<2x32xf32>
    %450 = arith.divf %448, %449 : vector<2x32xf32>
    %451 = vector.extract_strided_slice %434 {offsets = [0, 64], sizes = [2, 32], strides = [1, 1]} : vector<2x128xf32> to vector<2x32xf32>
    %452 = math.tanh %451 : vector<2x32xf32>
    %453 = vector.extract_strided_slice %434 {offsets = [0, 96], sizes = [2, 32], strides = [1, 1]} : vector<2x128xf32> to vector<2x32xf32>
    %454 = arith.negf %453 : vector<2x32xf32>
    %455 = math.exp %454 : vector<2x32xf32>
    %cst_80 = arith.constant 1.000000e+00 : f32
    %456 = vector.broadcast %cst_80 : f32 to vector<2x32xf32>
    %457 = arith.addf %456, %455 : vector<2x32xf32>
    %458 = arith.divf %456, %457 : vector<2x32xf32>
    %459 = arith.mulf %450, %403 : vector<2x32xf32>
    %460 = arith.mulf %444, %452 : vector<2x32xf32>
    %461 = arith.addf %459, %460 : vector<2x32xf32>
    %462 = math.tanh %461 : vector<2x32xf32>
    %463 = arith.mulf %458, %462 : vector<2x32xf32>
    %464 = vector.extract_strided_slice %438 {offsets = [0, 0], sizes = [2, 32], strides = [1, 1]} : vector<2x128xf32> to vector<2x32xf32>
    %465 = arith.negf %464 : vector<2x32xf32>
    %466 = math.exp %465 : vector<2x32xf32>
    %cst_81 = arith.constant 1.000000e+00 : f32
    %467 = vector.broadcast %cst_81 : f32 to vector<2x32xf32>
    %468 = arith.addf %467, %466 : vector<2x32xf32>
    %469 = arith.divf %467, %468 : vector<2x32xf32>
    %470 = vector.extract_strided_slice %438 {offsets = [0, 32], sizes = [2, 32], strides = [1, 1]} : vector<2x128xf32> to vector<2x32xf32>
    %471 = arith.negf %470 : vector<2x32xf32>
    %472 = math.exp %471 : vector<2x32xf32>
    %cst_82 = arith.constant 1.000000e+00 : f32
    %473 = vector.broadcast %cst_82 : f32 to vector<2x32xf32>
    %474 = arith.addf %473, %472 : vector<2x32xf32>
    %475 = arith.divf %473, %474 : vector<2x32xf32>
    %476 = vector.extract_strided_slice %438 {offsets = [0, 64], sizes = [2, 32], strides = [1, 1]} : vector<2x128xf32> to vector<2x32xf32>
    %477 = math.tanh %476 : vector<2x32xf32>
    %478 = vector.extract_strided_slice %438 {offsets = [0, 96], sizes = [2, 32], strides = [1, 1]} : vector<2x128xf32> to vector<2x32xf32>
    %479 = arith.negf %478 : vector<2x32xf32>
    %480 = math.exp %479 : vector<2x32xf32>
    %cst_83 = arith.constant 1.000000e+00 : f32
    %481 = vector.broadcast %cst_83 : f32 to vector<2x32xf32>
    %482 = arith.addf %481, %480 : vector<2x32xf32>
    %483 = arith.divf %481, %482 : vector<2x32xf32>
    %484 = arith.mulf %475, %428 : vector<2x32xf32>
    %485 = arith.mulf %469, %477 : vector<2x32xf32>
    %486 = arith.addf %484, %485 : vector<2x32xf32>
    %487 = math.tanh %486 : vector<2x32xf32>
    %488 = arith.mulf %483, %487 : vector<2x32xf32>
    %489 = tpu.concatenate %463, %488 in 1 : vector<2x32xf32>, vector<2x32xf32> -> vector<2x64xf32>
    %c0_84 = arith.constant 0 : index
    %c0_85 = arith.constant 0 : index
    %490 = vector.load %arg7[%c0_84, %c0_85] : memref<64x4xf32, #tpu.memory_space<vmem>>, vector<64x4xf32>
    %cst_86 = arith.constant dense<0.000000e+00> : vector<2x4xf32>
    %491 = tpu.matmul %489, %490, %cst_86 {dimension_numbers = #tpu.dot_dimension_numbers<[1], [0], [0], [1], [0, 0, 1, 1], [], []>} : vector<2x64xf32>, vector<64x4xf32>, vector<2x4xf32> -> vector<2x4xf32>
    %c0_87 = arith.constant 0 : index
    %c0_88 = arith.constant 0 : index
    %492 = vector.load %arg8[%c0_87, %c0_88] : memref<1x4xf32, #tpu.memory_space<vmem>>, vector<1x4xf32>
    %493 = vector.broadcast %492 : vector<1x4xf32> to vector<2x4xf32>
    %494 = arith.addf %491, %493 : vector<2x4xf32>
    %c0_89 = arith.constant 0 : index
    %c0_90 = arith.constant 0 : index
    %495 = vector.load %arg9[%c0_89, %c0_90] : memref<2x4xf32, #tpu.memory_space<vmem>>, vector<2x4xf32>
    tpu.vector_store %arg9[%c0_89, %c0_90], %494 {strides = array<i32>} : memref<2x4xf32, #tpu.memory_space<vmem>>, vector<2x4xf32>,
    return
  }
}

</mosaic_0001>

<bundles_post_ra>
// kernel: forward.1
= control target key start
LH: loop header
LB: loop body
LE: loop exit
PB: predicated region body
PF: predicated region fallthrough
CT: control target
= control target key end

     0   :  { %vm41_vm0 = vcmask 1046528   ;;  %vm54_vm1 = vcmask 1045504   ;;  %s3427_s24 = smov 32   ;;  %s3428_s25 = smov 64   ;;  %s4074_s0 = inlined_call_operand.vmem [shape: f32[2,10,32], index: 0, kind: input, shape index: {}]   ;;  %s4075_s1 = inlined_call_operand.vmem [shape: f32[96,32], index: 1, kind: input, shape index: {}]   ;;  %s4076_s2 = inlined_call_operand.vmem [shape: f32[1,32], index: 2, kind: input, shape index: {}]   ;;  %s4077_s3 = inlined_call_operand.vmem [shape: f32[32,256], index: 3, kind: input, shape index: {}]   ;;  %s4078_s4 = inlined_call_operand.vmem [shape: f32[1,256], index: 4, kind: input, shape index: {}]   ;;  %s4079_s5 = inlined_call_operand.vmem [shape: f32[32,128], index: 5, kind: input, shape index: {}]   ;;  %s4080_s6 = inlined_call_operand.vmem [shape: f32[32,128], index: 6, kind: input, shape index: {}]   ;;  %s4081_s7 = inlined_call_operand.vmem [shape: f32[64,4], index: 7, kind: input, shape index: {}]   ;;  %s4082_s8 = inlined_call_operand.vmem [shape: f32[1,4], index: 8, kind: input, shape index: {}]   ;;  %s4083_s9 = inlined_call_operand.hbm [shape: f32[2,4], index: 9, kind: output, shape index: {}]  }
   0x1   :  { %v3486_v0 = vld [vmem:[%s4074_s0] sm:$0xff]  ;;  %v34_v1 = vld [vmem:[%s4074_s0 + $0x8] sm:$0x3]  ;;  %v3496_v6 = vld [vmem:[%s4074_s0 + $0x10] sm:$0xff] }
   0x2   :  { %v42_v2 = vrot.slane %v3486_v0, 1  ;;  %v43_v3 = vrot.slane %v34_v1, 1  ;;  %v55_v4 = vrot.slane %v3486_v0, 2  ;;  %v56_v5 = vrot.slane %v34_v1, 2  ;;  %v36_v7 = vld [vmem:[%s4074_s0 + $0x18] sm:$0x3] }
   0x3   :  { %v45_v8 = vrot.slane %v3496_v6, 1  ;;  %v58_v9 = vrot.slane %v3496_v6, 2  ;;  %v73_v10 = vld [vmem:[%s4075_s1] sm:$0xff]  ;;  %v74_v11 = vld [vmem:[%s4075_s1 + $0x8] sm:$0xff]  ;;  %v46_v14 = vrot.slane %v36_v7, 1  ;;  %v59_v15 = vrot.slane %v36_v7, 2 }
   0x4   :  { %v44_v12 = vsel %vm41_vm0, %v42_v2, %v43_v3  ;;  %v57_v13 = vsel %vm54_vm1, %v55_v4, %v56_v5  ;;  %v75_v16 = vld [vmem:[%s4075_s1 + $0x10] sm:$0xff]  ;;  %v76_v17 = vld [vmem:[%s4075_s1 + $0x18] sm:$0xff]  ;;  %v3001_v18 = vpack.c.bf16 %v74_v11, %v73_v10  ;;  %v77_v22 = vld [vmem:[%s4075_s1 + $0x20] sm:$0xff] }
   0x5   :  { %48 = vrot.lane.b32.xlu0 %v44_v12, %s3427_s24  ;;  %61 = vrot.lane.b32.xlu1 %v57_v13, %s3428_s25  ;;  %v47_v19 = vsel %vm41_vm0, %v45_v8, %v46_v14  ;;  %v60_v20 = vsel %vm54_vm1, %v58_v9, %v59_v15  ;;  %v3005_v21 = vpack.c.bf16 %v76_v17, %v75_v16  ;;  %v78_v23 = vld [vmem:[%s4075_s1 + $0x28] sm:$0xff]  ;;  %v179_v25 = vld [vmem:[%s4077_s3 + $0x18] sm:$0xff] }
   0x6   :  { %3002 = vmatprep.subr.bf16.mxu0 %v3001_v18  ;;  %v177_v24 = vld [vmem:[%s4077_s3 + $0x8] sm:$0xff]  ;;  %v176_v26 = vld [vmem:[%s4077_s3] sm:$0xff]  ;;  %v178_v27 = vld [vmem:[%s4077_s3 + $0x10] sm:$0xff]  ;;  %v3009_v28 = vpack.c.bf16 %v78_v23, %v77_v22 }
   0x7   :  { %3004 = vmatpush3.bf16.msra.mxu0 %v3001_v18  ;;  %v3025_v29 = vpack.c.bf16 %v179_v25, %v177_v24  ;;  %v3027_v30 = vpack.c.bf16 %v178_v27, %v176_v26 }
   0x9   :  { %50 = vrot.lane.b32.xlu0 %v47_v19, %s3427_s24  ;;  %63 = vrot.lane.b32.xlu1 %v60_v20, %s3428_s25 }
   0xa   :  { %14 = vsyncpa [#allocation3], 0  ;;  %3006 = vmatprep.subr.bf16.mxu0 %v3005_v21  ;;  %v79_v31 = vld [vmem:[%s4075_s1 + $0x30] sm:$0xff]  ;;  %v80_v32 = vld [vmem:[%s4075_s1 + $0x38] sm:$0xff]  ;;  %3026 = vmatprep.subr.bf16.mxu1 %v3025_v29  ;;  %vm67_vm2 = vcmask 261120   ;;  %vm70_vm3 = vcmask 523264   ;;  %v186_v11 = vlaneseq }
   0xb   :  { %3008 = vmatpush3.bf16.msra.mxu0 %v3005_v21  ;;  %3028 = vmatpush1.bf16.msra.mxu1 %v3027_v30  ;;  %v3013_v33 = vpack.c.bf16 %v80_v32, %v79_v31  ;;  %v81_v34 = vld [vmem:[%s4075_s1 + $0x40] sm:$0xff]  ;;  %v82_v35 = vld [vmem:[%s4075_s1 + $0x48] sm:$0xff]  ;;  %v83_v37 = vld [vmem:[%s4075_s1 + $0x50] sm:$0xff]  ;;  %vm92_vm4 = vcmask 785408   ;;  %v3429_v56 = vmov 0.0   ;;  %v3430_v57 = vmov 0.0|0.0  }
   0xc   :  { %3010 = vmatprep.subr.bf16.mxu0 %v3009_v28  ;;  %v3017_v36 = vpack.c.bf16 %v82_v35, %v81_v34  ;;  %v84_v38 = vld [vmem:[%s4075_s1 + $0x58] sm:$0xff]  ;;  %v181_v48 = vld [vmem:[%s4077_s3 + $0x28] sm:$0xff]  ;;  %v180_v51 = vld [vmem:[%s4077_s3 + $0x20] sm:$0xff]  ;;  %266 = vmatprep.mubr.f32.mxu1 %v3429_v56  ;;  %vm3431_vm5 = vmmov 0   ;;  %v187_v12 = vshrl.u32 %v186_v11, 7  ;;  %vm542_vm6 = vcmask 1041409  }
   0xd   :  { %v3021_v39 = vpack.c.bf16 %v84_v38, %v83_v37  ;;  %v183_v49 = vld [vmem:[%s4077_s3 + $0x38] sm:$0xff]  ;;  %v182_v52 = vld [vmem:[%s4077_s3 + $0x30] sm:$0xff]  ;;  %v279_v54 = vld [vmem:[%s4079_s5] sm:$0xff]  ;;  %vm2531_vm7 = vcmask 1040384   ;;  %vm2607_vm8 = vcmask 25600  }
   0xe   :  { %v3029_v50 = vpack.c.bf16 %v183_v49, %v181_v48  ;;  %v3031_v53 = vpack.c.bf16 %v182_v52, %v180_v51  ;;  %v280_v55 = vld [vmem:[%s4079_s5 + $0x8] sm:$0xff]  ;;  %v281_v59 = vld [vmem:[%s4079_s5 + $0x10] sm:$0xff]  ;;  %v282_v60 = vld [vmem:[%s4079_s5 + $0x18] sm:$0xff]  ;;  %v188_v13 = vsub.s32 0, %v187_v12  ;;  %v192_v22 = vsub.s32 1, %v187_v12  ;;  %s3432_s5 = smov [#allocation2]  }
   0xf   :  { %3012 = vmatpush3.bf16.msra.mxu0 %v3009_v28  ;;  %v3585_v58 = vpack.c.bf16 %v280_v55, %v279_v54  ;;  %v3596_v61 = vpack.c.bf16 %v282_v60, %v281_v59  ;;  %v2623_v62 = vld [vmem:[%s4076_s2] ss:$0 sm:$0xff]  ;;  %v285_v8 = vld [vmem:[%s4080_s6 + $0x10] sm:$0xff]  ;;  %v286_v9 = vld [vmem:[%s4080_s6 + $0x18] sm:$0xff] }
  0x10   :  { %3014 = vmatprep.subr.bf16.mxu0 %v3013_v33  ;;  %3030 = vmatprep.subr.bf16.mxu1 %v3029_v50  ;;  %v283_v5 = vld [vmem:[%s4080_s6] sm:$0xff]  ;;  %v3630_v10 = vpack.c.bf16 %v286_v9, %v285_v8 }
  0x11   :  { %3032 = vmatpush1.bf16.msra.mxu1 %v3031_v53  ;;  %v184_v14 = vld [vmem:[%s4078_s4] sm:$0x3] }
  0x12   :  { %3033 = vmatprep.subr.bf16.mxu1 %v3430_v57  ;;  %v189_v17 = vrot.slane %v184_v14, %v188_v13  ;;  %v193_v28 = vrot.slane %v184_v14, %v192_v22 }
  0x13   :  { %3016 = vmatpush3.bf16.msra.mxu0 %v3013_v33 }
  0x14   :  { %3018 = vmatprep.subr.bf16.mxu0 %v3017_v36 }
  0x17   :  { %3020 = vmatpush3.bf16.msra.mxu0 %v3017_v36 }
  0x18   :  { %3022 = vmatprep.subr.bf16.mxu0 %v3021_v39 }
  0x1b   :  { %3024 = vmatpush3.bf16.msra.mxu0 %v3021_v39 }
  0x1c   :  { %3057 = vmatprep.subr.bf16.mxu0 %v3430_v57 }
  0x77   :  { %v49_v40 = vpop.permute.xlu0 %48  ;;  %v62_v41 = vpop.permute.xlu1 %61 }
  0x78   :  { %v68_v42 = vsel %vm67_vm2, %v3486_v0, %v49_v40 }
  0x79   :  { %v71_v43 = vsel %vm70_vm3, %v68_v42, %v62_v41 }
  0x7a   :  { %2803 = vmatprep.mubr.msk.f32.mxu0 %vm92_vm4, %v71_v43 }
  0x7b   :  { %v51_v44 = vpop.permute.xlu0 %50  ;;  %v64_v45 = vpop.permute.xlu1 %63 }
  0x7c   :  { %v69_v46 = vsel %vm67_vm2, %v3496_v6, %v51_v44  ;;  %v284_v6 = vld [vmem:[%s4080_s6 + $0x8] sm:$0xff] }
  0x7d   :  { %v72_v47 = vsel %vm70_vm3, %v69_v46, %v64_v45  ;;  %v3619_v7 = vpack.c.bf16 %v284_v6, %v283_v5 }
  0x7e   :  { %2804 = vmatmul.mubr.msk.f32.vlgmr.msra.gmra.mrb[0].mxu0 %vm92_vm4, %v72_v47 }
  0x7f   :  { %3059 = vmatpush3.bf16.msra.mxu0 %v3585_v58  ;;  %2858 = vmatprep.mubr.msk.f32.mxu0 %vm3431_vm5, %v3429_v56 }
  0x80   :  { %3060 = vmatprep.subr.bf16.mxu0 %v3430_v57 }
  0x83   :  { %3062 = vmatpush3.bf16.msra.mxu0 %v3596_v61 }
  0x84   :  { %3069 = vmatprep.subr.bf16.mxu0 %v3430_v57 }
 0x151   :  { %v2805_v63 = vpop.f32.mrb[0].mxu0 }
 0x152   :  { %v165_v0 = vpop.f32.mrb[1].mxu0  ;;  %v171_v2 = vadd.f32 %v2805_v63, %v2623_v62 }
 0x153   :  { %v166_v1 = vadd.f32 %v2623_v62, %v165_v0 }
 0x154   :  { %v175_v4 = vmax.f32 %v171_v2, 0.0 }
 0x155   :  { %v174_v3 = vmax.f32 %v166_v1, 0.0 }
 0x157   :  { %2626 = vmatmul.mubr.msk.f32.vlgmr.msra.gmra.mrb[0].mxu1 %vm67_vm2, %v174_v3 }
 0x158   :  { %3035 = vmatpush3.bf16.msra.mxu1 %v3585_v58  ;;  %272 = vmatprep.mubr.f32.mxu1 %v3429_v56 }
 0x159   :  { %3036 = vmatprep.subr.bf16.mxu1 %v3430_v57 }
 0x15b   :  { %2627 = vmatmul.mubr.msk.f32.gmra.mrb[2].mxu1 %vm67_vm2, %v175_v4 }
 0x15c   :  { %3038 = vmatpush3.bf16.msra.mxu1 %v3596_v61  ;;  %2814 = vmatprep.mubr.msk.f32.mxu1 %vm3431_vm5, %v3429_v56 }
 0x15d   :  { %3039 = vmatprep.subr.bf16.mxu1 %v3430_v57 }
 0x15f   :  { %2815 = vmatmul.mubr.f32.vlgmr.msra.gmra.mrb[4].mxu1 %v3429_v56 }
 0x160   :  { %3041 = vmatpush3.bf16.msra.mxu1 %v3619_v7  ;;  %2825 = vmatprep.mubr.msk.f32.mxu1 %vm3431_vm5, %v3429_v56 }
 0x161   :  { %3042 = vmatprep.subr.bf16.mxu1 %v3430_v57 }
 0x164   :  { %3044 = vmatpush3.bf16.msra.mxu1 %v3630_v10 }
 0x165   :  { %3045 = vmatprep.subr.bf16.mxu1 %v3430_v57 }
 0x167   :  { %2826 = vmatmul.mubr.f32.vlgmr.msra.gmra.mrb[6].mxu1 %v3429_v56 }
 0x168   :  { %3047 = vmatpush3.bf16.msra.mxu1 %v3585_v58  ;;  %2836 = vmatprep.mubr.msk.f32.mxu1 %vm3431_vm5, %v3429_v56 }
 0x169   :  { %3048 = vmatprep.subr.bf16.mxu1 %v3430_v57 }
 0x16c   :  { %3050 = vmatpush3.bf16.msra.mxu1 %v3596_v61 }
 0x16d   :  { %3051 = vmatprep.subr.bf16.mxu1 %v3430_v57 }
 0x22a   :  { %v268_v15 = vpop.f32.mrb[0].mxu1 }
 0x22b   :  { %v270_v16 = vpop.f32.mrb[1].mxu1  ;;  %v3647_v20 = vadd.f32 %v268_v15, %v189_v17 }
 0x22c   :  { %v3653_v30 = vadd.f32 %v270_v16, %v193_v28 }
 0x22e   :  { %v274_v18 = vpop.f32.mrb[2].mxu1 }
 0x22f   :  { %v276_v19 = vpop.f32.mrb[3].mxu1  ;;  %v3649_v23 = vadd.f32 %v274_v18, %v189_v17 }
 0x230   :  { %v3655_v31 = vadd.f32 %v276_v19, %v193_v28 }
 0x232   :  { %v356_v21 = vpop.f32.mrb[4].mxu1 }
 0x233   :  { %v361_v24 = vrot.slane %v356_v21, 1  ;;  %v364_v25 = vadd.f32 %v356_v21, %v3647_v20  ;;  %v2816_v26 = vpop.f32.mrb[5].mxu1 }
 0x235   :  { %v365_v27 = vadd.f32 %v361_v24, %v3649_v23  ;;  %3147 = vtanh.f32 %v364_v25  ;;  %v2628_v41 = vmul.f32 -1.442695, %v364_v25 }
 0x237   :  { %3149 = vtanh.f32 %v365_v27  ;;  %v2629_v42 = vmul.f32 -1.442695, %v365_v27 }
 0x23a   :  { %v432_v29 = vpop.f32.mrb[6].mxu1 }
 0x23b   :  { %v437_v32 = vrot.slane %v432_v29, 1  ;;  %v438_v33 = vrot.slane %v432_v29, 2  ;;  %v2827_v34 = vpop.f32.mrb[7].mxu1 }
 0x23d   :  { %v441_v35 = vadd.f32 %v437_v32, %v3653_v30  ;;  %v442_v36 = vadd.f32 %v438_v33, %v3655_v31 }
 0x23f   :  { %v3148_v37 = vpop.eup %3147  ;;  %3151 = vtanh.f32 %v441_v35  ;;  %v2630_v43 = vmul.f32 -1.442695, %v441_v35  ;;  %v2631_v44 = vmul.f32 -1.442695, %v442_v36 }
 0x240   :  { %3153 = vtanh.f32 %v442_v36  ;;  %461 = vrot.lane.b32.xlu1 %v3148_v37, %s3428_s25 }
 0x241   :  { %v3150_v38 = vpop.eup %3149  ;;  %3155 = vpow2.f32 %v2628_v41 }
 0x242   :  { %463 = vrot.lane.b32.xlu0 %v3150_v38, %s3428_s25  ;;  %3157 = vpow2.f32 %v2629_v42 }
 0x243   :  { %3159 = vpow2.f32 %v2630_v43 }
 0x244   :  { %3161 = vpow2.f32 %v2631_v44 }
 0x249   :  { %v3152_v39 = vpop.eup %3151 }
 0x24a   :  { %v3154_v40 = vpop.eup %3153  ;;  %509 = vrot.lane.b32.xlu0 %v3152_v39, %s3428_s25 }
 0x24b   :  { %511 = vrot.lane.b32.xlu1 %v3154_v40, %s3428_s25  ;;  %v3156_v45 = vpop.eup %3155 }
 0x24c   :  { %v3158_v46 = vpop.eup %3157  ;;  %v449_v47 = vadd.f32 1.0, %v3156_v45 }
 0x24d   :  { %v450_v48 = vadd.f32 1.0, %v3158_v46  ;;  %v3160_v49 = vpop.eup %3159 }
 0x24e   :  { %3163 = vrcp.f32 %v449_v47  ;;  %v3162_v50 = vpop.eup %3161  ;;  %v497_v51 = vadd.f32 1.0, %v3160_v49 }
 0x24f   :  { %3165 = vrcp.f32 %v450_v48  ;;  %v498_v52 = vadd.f32 1.0, %v3162_v50 }
 0x250   :  { %3167 = vrcp.f32 %v497_v51 }
 0x251   :  { %3169 = vrcp.f32 %v498_v52 }
 0x258   :  { %v3164_v53 = vpop.eup %3163 }
 0x259   :  { %v3166_v59 = vpop.eup %3165  ;;  %v457_v5 = vmul.f32 0.0, %v3164_v53 }
 0x25a   :  { %v3168_v63 = vpop.eup %3167  ;;  %v458_v9 = vmul.f32 0.0, %v3166_v59 }
 0x25b   :  { %v3170_v1 = vpop.eup %3169  ;;  %v505_v13 = vmul.f32 0.0, %v3168_v63 }
 0x25c   :  { %v506_v15 = vmul.f32 0.0, %v3170_v1 }
 0x2b2   :  { %v462_v54 = vpop.permute.xlu1 %461 }
 0x2b3   :  { %v467_v55 = vmul.f32 %v3164_v53, %v462_v54 }
 0x2b4   :  { %v464_v60 = vpop.permute.xlu0 %463 }
 0x2b5   :  { %471 = vrot.lane.b32.xlu1 %v467_v55, %s3427_s24  ;;  %v468_v62 = vmul.f32 %v3166_v59, %v464_v60 }
 0x2b7   :  { %473 = vrot.lane.b32.xlu0 %v468_v62, %s3427_s24 }
 0x2bc   :  { %v510_v0 = vpop.permute.xlu0 %509 }
 0x2bd   :  { %v515_v2 = vmul.f32 %v3168_v63, %v510_v0  ;;  %v512_v3 = vpop.permute.xlu1 %511 }
 0x2be   :  { %v516_v4 = vmul.f32 %v3170_v1, %v512_v3 }
 0x2bf   :  { %519 = vrot.lane.b32.xlu0 %v515_v2, %s3427_s24 }
 0x2c0   :  { %521 = vrot.lane.b32.xlu1 %v516_v4, %s3427_s24 }
 0x327   :  { %v472_v6 = vpop.permute.xlu1 %471 }
 0x328   :  { %v3667_v8 = vadd.f32 %v472_v6, %v457_v5 }
 0x329   :  { %v474_v11 = vpop.permute.xlu0 %473 }
 0x32a   :  { %3171 = vtanh.f32 %v3667_v8  ;;  %v3670_v12 = vadd.f32 %v474_v11, %v458_v9 }
 0x32c   :  { %3173 = vtanh.f32 %v3670_v12 }
 0x331   :  { %v520_v14 = vpop.permute.xlu0 %519 }
 0x332   :  { %v3673_v16 = vadd.f32 %v520_v14, %v505_v13  ;;  %v522_v17 = vpop.permute.xlu1 %521 }
 0x333   :  { %v3675_v18 = vadd.f32 %v522_v17, %v506_v15 }
 0x334   :  { %v3172_v19 = vpop.eup %3171  ;;  %3175 = vtanh.f32 %v3673_v16 }
 0x335   :  { %3177 = vtanh.f32 %v3675_v18  ;;  %483 = vrot.lane.b32.xlu1 %v3172_v19, %s3428_s25 }
 0x336   :  { %v3174_v21 = vpop.eup %3173 }
 0x337   :  { %485 = vrot.lane.b32.xlu0 %v3174_v21, %s3428_s25 }
 0x33e   :  { %v3176_v22 = vpop.eup %3175 }
 0x33f   :  { %v3178_v24 = vpop.eup %3177  ;;  %531 = vrot.lane.b32.xlu0 %v3176_v22, %s3428_s25 }
 0x340   :  { %533 = vrot.lane.b32.xlu1 %v3178_v24, %s3428_s25 }
 0x3a7   :  { %v484_v25 = vpop.permute.xlu1 %483 }
 0x3a8   :  { %v489_v28 = vmul.f32 %v3164_v53, %v484_v25 }
 0x3a9   :  { %v486_v26 = vpop.permute.xlu0 %485 }
 0x3aa   :  { %v490_v27 = vmul.f32 %v3166_v59, %v486_v26 }
 0x3ac   :  { %v541_v29 = vrot.slane %v490_v27, 7 }
 0x3ae   :  { %v543_v32 = vsel %vm542_vm6, %v541_v29, %v489_v28  ;;  %v727_v29 = vrot.slane %v3670_v12, 7 }
 0x3af   :  { %544 = vrot.lane.b32.xlu0 %v543_v32, %s3427_s24 }
 0x3b1   :  { %v532_v33 = vpop.permute.xlu0 %531 }
 0x3b2   :  { %v537_v34 = vmul.f32 %v3168_v63, %v532_v33  ;;  %v534_v35 = vpop.permute.xlu1 %533  ;;  %v726_v33 = vrot.slane %v3667_v8, 7 }
 0x3b3   :  { %v538_v36 = vmul.f32 %v3170_v1, %v534_v35 }
 0x3b4   :  { %v626_v37 = vrot.slane %v537_v34, 7 }
 0x3b5   :  { %v627_v38 = vrot.slane %v538_v36, 6 }
 0x3b7   :  { %v628_v39 = vsel %vm542_vm6, %v627_v38, %v626_v37 }
 0x3b8   :  { %629 = vrot.lane.b32.xlu1 %v628_v39, %s3427_s24  ;;  %v780_v39 = vrot.slane %v3673_v16, 1 }
 0x421   :  { %v545_v40 = vpop.permute.xlu0 %544 }
 0x422   :  { %2837 = vmatmul.mubr.msk.f32.vlgmr.msra.gmra.mrb[8].mxu1 %vm67_vm2, %v545_v40  ;;  %v781_v40 = vrot.slane %v3675_v18, 1 }
 0x423   :  { %3053 = vmatpush3.bf16.msra.mxu1 %v3619_v7  ;;  %2847 = vmatprep.mubr.msk.f32.mxu1 %vm3431_vm5, %v3429_v56 }
 0x424   :  { %3054 = vmatprep.subr.bf16.mxu1 %v3430_v57 }
 0x427   :  { %3056 = vmatpush3.bf16.msra.mxu1 %v3630_v10 }
 0x428   :  { %3063 = vmatprep.subr.bf16.mxu1 %v3430_v57 }
 0x42a   :  { %v630_v41 = vpop.permute.xlu1 %629 }
 0x42b   :  { %2848 = vmatmul.mubr.msk.f32.vlgmr.msra.gmra.mrb[10].mxu1 %vm67_vm2, %v630_v41 }
 0x42c   :  { %3065 = vmatpush3.bf16.msra.mxu1 %v3619_v7  ;;  %2869 = vmatprep.mubr.msk.f32.mxu1 %vm3431_vm5, %v3429_v56 }
 0x42d   :  { %3066 = vmatprep.subr.bf16.mxu1 %v3430_v57 }
 0x430   :  { %3068 = vmatpush3.bf16.msra.mxu1 %v3630_v10 }
 0x431   :  { %3075 = vmatprep.subr.bf16.mxu1 %v3430_v57 }
 0x4f5   :  { %v614_v42 = vpop.f32.mrb[8].mxu1 }
 0x4f6   :  { %v619_v43 = vrot.slane %v614_v42, 7  ;;  %v623_v44 = vadd.f32 %v614_v42, %v3649_v23  ;;  %v2838_v45 = vpop.f32.mrb[9].mxu1 }
 0x4f8   :  { %v622_v46 = vadd.f32 %v619_v43, %v3647_v20  ;;  %3179 = vtanh.f32 %v623_v44  ;;  %v2635_v60 = vmul.f32 -1.442695, %v623_v44 }
 0x4fa   :  { %3181 = vtanh.f32 %v622_v46  ;;  %v2634_v62 = vmul.f32 -1.442695, %v622_v46 }
 0x4fe   :  { %v699_v47 = vpop.f32.mrb[10].mxu1 }
 0x4ff   :  { %v704_v48 = vrot.slane %v699_v47, 2  ;;  %v705_v49 = vrot.slane %v699_v47, 3  ;;  %v2849_v50 = vpop.f32.mrb[11].mxu1 }
 0x501   :  { %v708_v51 = vadd.f32 %v704_v48, %v3653_v30  ;;  %v709_v52 = vadd.f32 %v705_v49, %v3655_v31 }
 0x502   :  { %v3180_v53 = vpop.eup %3179 }
 0x503   :  { %3183 = vtanh.f32 %v708_v51  ;;  %736 = vrot.lane.b32.xlu1 %v3180_v53, %s3428_s25  ;;  %v2636_v63 = vmul.f32 -1.442695, %v708_v51  ;;  %v2637_v0 = vmul.f32 -1.442695, %v709_v52 }
 0x504   :  { %3185 = vtanh.f32 %v709_v52  ;;  %v3182_v54 = vpop.eup %3181 }
 0x505   :  { %734 = vrot.lane.b32.xlu0 %v3182_v54, %s3428_s25  ;;  %3187 = vpow2.f32 %v2635_v60 }
 0x506   :  { %3189 = vpow2.f32 %v2634_v62 }
 0x507   :  { %3191 = vpow2.f32 %v2636_v63 }
 0x508   :  { %3193 = vpow2.f32 %v2637_v0 }
 0x50d   :  { %v3184_v55 = vpop.eup %3183 }
 0x50e   :  { %v3186_v59 = vpop.eup %3185  ;;  %788 = vrot.lane.b32.xlu0 %v3184_v55, %s3428_s25 }
 0x50f   :  { %790 = vrot.lane.b32.xlu1 %v3186_v59, %s3428_s25  ;;  %v3188_v1 = vpop.eup %3187 }
 0x510   :  { %v3190_v2 = vpop.eup %3189  ;;  %v717_v3 = vadd.f32 1.0, %v3188_v1 }
 0x511   :  { %v716_v4 = vadd.f32 1.0, %v3190_v2  ;;  %v3192_v5 = vpop.eup %3191 }
 0x512   :  { %3195 = vrcp.f32 %v717_v3  ;;  %v3194_v6 = vpop.eup %3193  ;;  %v770_v9 = vadd.f32 1.0, %v3192_v5 }
 0x513   :  { %3197 = vrcp.f32 %v716_v4  ;;  %v771_v11 = vadd.f32 1.0, %v3194_v6 }
 0x514   :  { %3199 = vrcp.f32 %v770_v9 }
 0x515   :  { %3201 = vrcp.f32 %v771_v11 }
 0x51c   :  { %v3196_v13 = vpop.eup %3195 }
 0x51d   :  { %v3198_v17 = vpop.eup %3197  ;;  %v731_v32 = vmul.f32 %v3196_v13, %v727_v29 }
 0x51e   :  { %v3200_v22 = vpop.eup %3199  ;;  %v730_v36 = vmul.f32 %v3198_v17, %v726_v33 }
 0x51f   :  { %v3202_v25 = vpop.eup %3201  ;;  %v784_v41 = vmul.f32 %v3200_v22, %v780_v39 }
 0x520   :  { %v785_v42 = vmul.f32 %v3202_v25, %v781_v40 }
 0x575   :  { %v737_v14 = vpop.permute.xlu1 %736 }
 0x576   :  { %v741_v15 = vmul.f32 %v3196_v13, %v737_v14 }
 0x577   :  { %v735_v19 = vpop.permute.xlu0 %734 }
 0x578   :  { %746 = vrot.lane.b32.xlu1 %v741_v15, %s3427_s24  ;;  %v740_v21 = vmul.f32 %v3198_v17, %v735_v19 }
 0x57a   :  { %744 = vrot.lane.b32.xlu0 %v740_v21, %s3427_s24 }
 0x580   :  { %v789_v24 = vpop.permute.xlu0 %788 }
 0x581   :  { %v794_v26 = vmul.f32 %v3200_v22, %v789_v24  ;;  %v791_v27 = vpop.permute.xlu1 %790 }
 0x582   :  { %v795_v28 = vmul.f32 %v3202_v25, %v791_v27 }
 0x583   :  { %798 = vrot.lane.b32.xlu0 %v794_v26, %s3427_s24 }
 0x584   :  { %800 = vrot.lane.b32.xlu1 %v795_v28, %s3427_s24 }
 0x5ea   :  { %v747_v34 = vpop.permute.xlu1 %746 }
 0x5eb   :  { %v3715_v35 = vadd.f32 %v747_v34, %v731_v32 }
 0x5ec   :  { %v745_v37 = vpop.permute.xlu0 %744 }
 0x5ed   :  { %3203 = vtanh.f32 %v3715_v35  ;;  %v3718_v38 = vadd.f32 %v745_v37, %v730_v36 }
 0x5ef   :  { %3205 = vtanh.f32 %v3718_v38 }
 0x5f5   :  { %v799_v12 = vpop.permute.xlu0 %798 }
 0x5f6   :  { %v3723_v43 = vadd.f32 %v799_v12, %v784_v41  ;;  %v801_v8 = vpop.permute.xlu1 %800 }
 0x5f7   :  { %v3725_v44 = vadd.f32 %v801_v8, %v785_v42  ;;  %v3204_v45 = vpop.eup %3203 }
 0x5f8   :  { %3207 = vtanh.f32 %v3723_v43  ;;  %758 = vrot.lane.b32.xlu1 %v3204_v45, %s3428_s25 }
 0x5f9   :  { %3209 = vtanh.f32 %v3725_v44  ;;  %v3206_v46 = vpop.eup %3205 }
 0x5fa   :  { %756 = vrot.lane.b32.xlu0 %v3206_v46, %s3428_s25 }
 0x602   :  { %v3208_v16 = vpop.eup %3207 }
 0x603   :  { %v3210_v18 = vpop.eup %3209  ;;  %810 = vrot.lane.b32.xlu0 %v3208_v16, %s3428_s25 }
 0x604   :  { %812 = vrot.lane.b32.xlu1 %v3210_v18, %s3428_s25 }
 0x66a   :  { %v759_v47 = vpop.permute.xlu1 %758 }
 0x66b   :  { %v763_v50 = vmul.f32 %v3196_v13, %v759_v47 }
 0x66c   :  { %v757_v48 = vpop.permute.xlu0 %756 }
 0x66d   :  { %v762_v49 = vmul.f32 %v3198_v17, %v757_v48 }
 0x66f   :  { %v820_v51 = vrot.slane %v762_v49, 1 }
 0x671   :  { %v821_v52 = vsel %vm542_vm6, %v763_v50, %v820_v51 }
 0x672   :  { %822 = vrot.lane.b32.xlu0 %v821_v52, %s3427_s24  ;;  %v1005_v52 = vrot.slane %v3718_v38, 7 }
 0x675   :  { %v811_v53 = vpop.permute.xlu0 %810 }
 0x676   :  { %v816_v54 = vmul.f32 %v3200_v22, %v811_v53  ;;  %v813_v55 = vpop.permute.xlu1 %812  ;;  %v1006_v53 = vrot.slane %v3715_v35, 7 }
 0x677   :  { %v817_v59 = vmul.f32 %v3202_v25, %v813_v55 }
 0x678   :  { %v905_v60 = vrot.slane %v816_v54, 6 }
 0x679   :  { %v906_v62 = vrot.slane %v817_v59, 5 }
 0x67b   :  { %v907_v63 = vsel %vm542_vm6, %v906_v62, %v905_v60 }
 0x67c   :  { %908 = vrot.lane.b32.xlu1 %v907_v63, %s3427_s24 }
 0x6e4   :  { %v823_v0 = vpop.permute.xlu0 %822 }
 0x6e5   :  { %2859 = vmatmul.mubr.msk.f32.vlgmr.msra.gmra.mrb[2].mxu0 %vm67_vm2, %v823_v0  ;;  %v1059_v0 = vrot.slane %v3723_v43, 1 }
 0x6e6   :  { %3071 = vmatpush3.bf16.msra.mxu0 %v3585_v58  ;;  %2880 = vmatprep.mubr.msk.f32.mxu0 %vm3431_vm5, %v3429_v56 }
 0x6e7   :  { %3072 = vmatprep.subr.bf16.mxu0 %v3430_v57 }
 0x6ea   :  { %3074 = vmatpush3.bf16.msra.mxu0 %v3596_v61 }
 0x6eb   :  { %3081 = vmatprep.subr.bf16.mxu0 %v3430_v57 }
 0x6ee   :  { %v909_v1 = vpop.permute.xlu1 %908 }
 0x6ef   :  { %2870 = vmatmul.mubr.msk.f32.vlgmr.msra.gmra.mrb[12].mxu1 %vm67_vm2, %v909_v1  ;;  %v1060_v1 = vrot.slane %v3725_v44, 1 }
 0x6f0   :  { %3077 = vmatpush3.bf16.msra.mxu1 %v3619_v7  ;;  %2891 = vmatprep.mubr.msk.f32.mxu1 %vm3431_vm5, %v3429_v56 }
 0x6f1   :  { %3078 = vmatprep.subr.bf16.mxu1 %v3430_v57 }
 0x6f4   :  { %3080 = vmatpush3.bf16.msra.mxu1 %v3630_v10 }
 0x6f5   :  { %3087 = vmatprep.subr.bf16.mxu1 %v3430_v57 }
 0x7b8   :  { %v892_v2 = vpop.f32.mrb[2].mxu0 }
 0x7b9   :  { %v897_v3 = vrot.slane %v892_v2, 6  ;;  %v898_v4 = vrot.slane %v892_v2, 7  ;;  %v2860_v5 = vpop.f32.mrb[3].mxu0 }
 0x7bb   :  { %v901_v6 = vadd.f32 %v897_v3, %v3647_v20  ;;  %v902_v9 = vadd.f32 %v898_v4, %v3649_v23 }
 0x7bd   :  { %3211 = vtanh.f32 %v901_v6  ;;  %v2640_v26 = vmul.f32 -1.442695, %v901_v6  ;;  %v2641_v27 = vmul.f32 -1.442695, %v902_v9 }
 0x7be   :  { %3213 = vtanh.f32 %v902_v9 }
 0x7c2   :  { %v978_v11 = vpop.f32.mrb[12].mxu1 }
 0x7c3   :  { %v983_v13 = vrot.slane %v978_v11, 3  ;;  %v984_v14 = vrot.slane %v978_v11, 4  ;;  %v2871_v15 = vpop.f32.mrb[13].mxu1 }
 0x7c5   :  { %v987_v17 = vadd.f32 %v983_v13, %v3653_v30  ;;  %v988_v19 = vadd.f32 %v984_v14, %v3655_v31 }
 0x7c7   :  { %3215 = vtanh.f32 %v987_v17  ;;  %v3212_v21 = vpop.eup %3211  ;;  %v2642_v28 = vmul.f32 -1.442695, %v987_v17  ;;  %v2643_v29 = vmul.f32 -1.442695, %v988_v19 }
 0x7c8   :  { %3217 = vtanh.f32 %v988_v19  ;;  %v3214_v22 = vpop.eup %3213  ;;  %1013 = vrot.lane.b32.xlu0 %v3212_v21, %s3428_s25 }
 0x7c9   :  { %1015 = vrot.lane.b32.xlu1 %v3214_v22, %s3428_s25  ;;  %3219 = vpow2.f32 %v2640_v26 }
 0x7ca   :  { %3221 = vpow2.f32 %v2641_v27 }
 0x7cb   :  { %3223 = vpow2.f32 %v2642_v28 }
 0x7cc   :  { %3225 = vpow2.f32 %v2643_v29 }
 0x7d1   :  { %v3216_v24 = vpop.eup %3215 }
 0x7d2   :  { %v3218_v25 = vpop.eup %3217  ;;  %1067 = vrot.lane.b32.xlu0 %v3216_v24, %s3428_s25 }
 0x7d3   :  { %1069 = vrot.lane.b32.xlu1 %v3218_v25, %s3428_s25  ;;  %v3220_v32 = vpop.eup %3219 }
 0x7d4   :  { %v3222_v33 = vpop.eup %3221  ;;  %v995_v34 = vadd.f32 1.0, %v3220_v32 }
 0x7d5   :  { %v996_v36 = vadd.f32 1.0, %v3222_v33  ;;  %v3224_v37 = vpop.eup %3223 }
 0x7d6   :  { %3227 = vrcp.f32 %v995_v34  ;;  %v3226_v39 = vpop.eup %3225  ;;  %v1049_v40 = vadd.f32 1.0, %v3224_v37 }
 0x7d7   :  { %3229 = vrcp.f32 %v996_v36  ;;  %v1050_v41 = vadd.f32 1.0, %v3226_v39 }
 0x7d8   :  { %3231 = vrcp.f32 %v1049_v40 }
 0x7d9   :  { %3233 = vrcp.f32 %v1050_v41 }
 0x7e0   :  { %v3228_v12 = vpop.eup %3227 }
 0x7e1   :  { %v3230_v8 = vpop.eup %3229  ;;  %v1009_v54 = vmul.f32 %v3228_v12, %v1005_v52 }
 0x7e2   :  { %v3232_v18 = vpop.eup %3231  ;;  %v1010_v59 = vmul.f32 %v3230_v8, %v1006_v53 }
 0x7e3   :  { %v3234_v48 = vpop.eup %3233  ;;  %v1063_v2 = vmul.f32 %v3232_v18, %v1059_v0 }
 0x7e4   :  { %v1064_v3 = vmul.f32 %v3234_v48, %v1060_v1 }
 0x83a   :  { %v1014_v42 = vpop.permute.xlu0 %1013 }
 0x83b   :  { %v1019_v45 = vmul.f32 %v3228_v12, %v1014_v42  ;;  %v1016_v46 = vpop.permute.xlu1 %1015 }
 0x83c   :  { %v1020_v16 = vmul.f32 %v3230_v8, %v1016_v46 }
 0x83d   :  { %1023 = vrot.lane.b32.xlu0 %v1019_v45, %s3427_s24 }
 0x83e   :  { %1025 = vrot.lane.b32.xlu1 %v1020_v16, %s3427_s24 }
 0x844   :  { %v1068_v47 = vpop.permute.xlu0 %1067 }
 0x845   :  { %v1073_v49 = vmul.f32 %v3232_v18, %v1068_v47  ;;  %v1070_v50 = vpop.permute.xlu1 %1069 }
 0x846   :  { %v1074_v51 = vmul.f32 %v3234_v48, %v1070_v50 }
 0x847   :  { %1077 = vrot.lane.b32.xlu0 %v1073_v49, %s3427_s24 }
 0x848   :  { %1079 = vrot.lane.b32.xlu1 %v1074_v51, %s3427_s24 }
 0x8af   :  { %v1024_v55 = vpop.permute.xlu0 %1023 }
 0x8b0   :  { %v3765_v60 = vadd.f32 %v1024_v55, %v1009_v54  ;;  %v1026_v62 = vpop.permute.xlu1 %1025 }
 0x8b1   :  { %v3767_v63 = vadd.f32 %v1026_v62, %v1010_v59 }
 0x8b2   :  { %3235 = vtanh.f32 %v3765_v60 }
 0x8b3   :  { %3237 = vtanh.f32 %v3767_v63 }
 0x8b9   :  { %v1078_v38 = vpop.permute.xlu0 %1077 }
 0x8ba   :  { %v3773_v35 = vadd.f32 %v1078_v38, %v1063_v2  ;;  %v1080_v4 = vpop.permute.xlu1 %1079 }
 0x8bb   :  { %v3775_v5 = vadd.f32 %v1080_v4, %v1064_v3 }
 0x8bc   :  { %3239 = vtanh.f32 %v3773_v35  ;;  %v3236_v6 = vpop.eup %3235 }
 0x8bd   :  { %3241 = vtanh.f32 %v3775_v5  ;;  %v3238_v9 = vpop.eup %3237  ;;  %1035 = vrot.lane.b32.xlu0 %v3236_v6, %s3428_s25 }
 0x8be   :  { %1037 = vrot.lane.b32.xlu1 %v3238_v9, %s3428_s25 }
 0x8c6   :  { %v3240_v43 = vpop.eup %3239 }
 0x8c7   :  { %v3242_v44 = vpop.eup %3241  ;;  %1089 = vrot.lane.b32.xlu0 %v3240_v43, %s3428_s25 }
 0x8c8   :  { %1091 = vrot.lane.b32.xlu1 %v3242_v44, %s3428_s25 }
 0x92f   :  { %v1036_v11 = vpop.permute.xlu0 %1035 }
 0x930   :  { %v1041_v13 = vmul.f32 %v3228_v12, %v1036_v11  ;;  %v1038_v14 = vpop.permute.xlu1 %1037 }
 0x931   :  { %v1042_v15 = vmul.f32 %v3230_v8, %v1038_v14 }
 0x932   :  { %v1099_v17 = vrot.slane %v1041_v13, 2 }
 0x933   :  { %v1100_v19 = vrot.slane %v1042_v15, 1 }
 0x935   :  { %v1101_v21 = vsel %vm542_vm6, %v1100_v19, %v1099_v17 }
 0x936   :  { %1102 = vrot.lane.b32.xlu0 %v1101_v21, %s3427_s24  ;;  %v1285_v21 = vrot.slane %v3765_v60, 7 }
 0x939   :  { %v1090_v22 = vpop.permute.xlu0 %1089 }
 0x93a   :  { %v1095_v24 = vmul.f32 %v3232_v18, %v1090_v22  ;;  %v1092_v25 = vpop.permute.xlu1 %1091  ;;  %v1286_v22 = vrot.slane %v3767_v63, 7 }
 0x93b   :  { %v1096_v26 = vmul.f32 %v3234_v48, %v1092_v25 }
 0x93c   :  { %v1185_v27 = vrot.slane %v1095_v24, 5 }
 0x93d   :  { %v1186_v28 = vrot.slane %v1096_v26, 4 }
 0x93f   :  { %v1187_v29 = vsel %vm542_vm6, %v1186_v28, %v1185_v27 }
 0x940   :  { %1188 = vrot.lane.b32.xlu1 %v1187_v29, %s3427_s24 }
 0x9a8   :  { %v1103_v32 = vpop.permute.xlu0 %1102 }
 0x9a9   :  { %2881 = vmatmul.mubr.msk.f32.vlgmr.msra.gmra.mrb[4].mxu0 %vm67_vm2, %v1103_v32  ;;  %v1339_v32 = vrot.slane %v3773_v35, 1 }
 0x9aa   :  { %3083 = vmatpush3.bf16.msra.mxu0 %v3585_v58  ;;  %2902 = vmatprep.mubr.msk.f32.mxu0 %vm3431_vm5, %v3429_v56 }
 0x9ab   :  { %3084 = vmatprep.subr.bf16.mxu0 %v3430_v57 }
 0x9ae   :  { %3086 = vmatpush3.bf16.msra.mxu0 %v3596_v61 }
 0x9af   :  { %3093 = vmatprep.subr.bf16.mxu0 %v3430_v57 }
 0x9b2   :  { %v1189_v33 = vpop.permute.xlu1 %1188 }
 0x9b3   :  { %2892 = vmatmul.mubr.msk.f32.vlgmr.msra.gmra.mrb[14].mxu1 %vm67_vm2, %v1189_v33  ;;  %v1340_v33 = vrot.slane %v3775_v5, 1 }
 0x9b4   :  { %3089 = vmatpush3.bf16.msra.mxu1 %v3619_v7  ;;  %2913 = vmatprep.mubr.msk.f32.mxu1 %vm3431_vm5, %v3429_v56 }
 0x9b5   :  { %3090 = vmatprep.subr.bf16.mxu1 %v3430_v57 }
 0x9b8   :  { %3092 = vmatpush3.bf16.msra.mxu1 %v3630_v10 }
 0x9b9   :  { %3099 = vmatprep.subr.bf16.mxu1 %v3430_v57 }
 0xa7c   :  { %v1172_v34 = vpop.f32.mrb[4].mxu0 }
 0xa7d   :  { %v1177_v36 = vrot.slane %v1172_v34, 5  ;;  %v1178_v37 = vrot.slane %v1172_v34, 6  ;;  %v2882_v39 = vpop.f32.mrb[5].mxu0 }
 0xa7f   :  { %v1181_v40 = vadd.f32 %v1177_v36, %v3647_v20  ;;  %v1182_v41 = vadd.f32 %v1178_v37, %v3649_v23 }
 0xa81   :  { %3243 = vtanh.f32 %v1181_v40  ;;  %v2646_v50 = vmul.f32 -1.442695, %v1181_v40  ;;  %v2647_v51 = vmul.f32 -1.442695, %v1182_v41 }
 0xa82   :  { %3245 = vtanh.f32 %v1182_v41 }
 0xa86   :  { %v1258_v12 = vpop.f32.mrb[14].mxu1 }
 0xa87   :  { %v1263_v42 = vrot.slane %v1258_v12, 4  ;;  %v1264_v8 = vrot.slane %v1258_v12, 5  ;;  %v2893_v45 = vpop.f32.mrb[15].mxu1 }
 0xa89   :  { %v1267_v46 = vadd.f32 %v1263_v42, %v3653_v30  ;;  %v1268_v16 = vadd.f32 %v1264_v8, %v3655_v31 }
 0xa8b   :  { %3247 = vtanh.f32 %v1267_v46  ;;  %v3244_v18 = vpop.eup %3243  ;;  %v2648_v52 = vmul.f32 -1.442695, %v1267_v46  ;;  %v2649_v53 = vmul.f32 -1.442695, %v1268_v16 }
 0xa8c   :  { %3249 = vtanh.f32 %v1268_v16  ;;  %v3246_v47 = vpop.eup %3245  ;;  %1293 = vrot.lane.b32.xlu0 %v3244_v18, %s3428_s25 }
 0xa8d   :  { %1295 = vrot.lane.b32.xlu1 %v3246_v47, %s3428_s25  ;;  %3251 = vpow2.f32 %v2646_v50 }
 0xa8e   :  { %3253 = vpow2.f32 %v2647_v51 }
 0xa8f   :  { %3255 = vpow2.f32 %v2648_v52 }
 0xa90   :  { %3257 = vpow2.f32 %v2649_v53 }
 0xa95   :  { %v3248_v48 = vpop.eup %3247 }
 0xa96   :  { %v3250_v49 = vpop.eup %3249  ;;  %1347 = vrot.lane.b32.xlu0 %v3248_v48, %s3428_s25 }
 0xa97   :  { %1349 = vrot.lane.b32.xlu1 %v3250_v49, %s3428_s25  ;;  %v3252_v54 = vpop.eup %3251 }
 0xa98   :  { %v3254_v55 = vpop.eup %3253  ;;  %v1275_v59 = vadd.f32 1.0, %v3252_v54 }
 0xa99   :  { %v1276_v62 = vadd.f32 1.0, %v3254_v55  ;;  %v3256_v0 = vpop.eup %3255 }
 0xa9a   :  { %3259 = vrcp.f32 %v1275_v59  ;;  %v3258_v1 = vpop.eup %3257  ;;  %v1329_v2 = vadd.f32 1.0, %v3256_v0 }
 0xa9b   :  { %3261 = vrcp.f32 %v1276_v62  ;;  %v1330_v38 = vadd.f32 1.0, %v3258_v1 }
 0xa9c   :  { %3263 = vrcp.f32 %v1329_v2 }
 0xa9d   :  { %3265 = vrcp.f32 %v1330_v38 }
 0xaa4   :  { %v3260_v3 = vpop.eup %3259 }
 0xaa5   :  { %v3262_v6 = vpop.eup %3261  ;;  %v1289_v24 = vmul.f32 %v3260_v3, %v1285_v21 }
 0xaa6   :  { %v3264_v11 = vpop.eup %3263  ;;  %v1290_v26 = vmul.f32 %v3262_v6, %v1286_v22 }
 0xaa7   :  { %v3266_v14 = vpop.eup %3265  ;;  %v1343_v34 = vmul.f32 %v3264_v11, %v1339_v32 }
 0xaa8   :  { %v1344_v36 = vmul.f32 %v3266_v14, %v1340_v33 }
 0xafe   :  { %v1294_v4 = vpop.permute.xlu0 %1293 }
 0xaff   :  { %v1299_v9 = vmul.f32 %v3260_v3, %v1294_v4  ;;  %v1296_v43 = vpop.permute.xlu1 %1295 }
 0xb00   :  { %v1300_v44 = vmul.f32 %v3262_v6, %v1296_v43 }
 0xb01   :  { %1303 = vrot.lane.b32.xlu0 %v1299_v9, %s3427_s24 }
 0xb02   :  { %1305 = vrot.lane.b32.xlu1 %v1300_v44, %s3427_s24 }
 0xb08   :  { %v1348_v13 = vpop.permute.xlu0 %1347 }
 0xb09   :  { %v1353_v15 = vmul.f32 %v3264_v11, %v1348_v13  ;;  %v1350_v17 = vpop.permute.xlu1 %1349 }
 0xb0a   :  { %v1354_v19 = vmul.f32 %v3266_v14, %v1350_v17 }
 0xb0b   :  { %1357 = vrot.lane.b32.xlu0 %v1353_v15, %s3427_s24 }
 0xb0c   :  { %1359 = vrot.lane.b32.xlu1 %v1354_v19, %s3427_s24 }
 0xb73   :  { %v1304_v25 = vpop.permute.xlu0 %1303 }
 0xb74   :  { %v3815_v27 = vadd.f32 %v1304_v25, %v1289_v24  ;;  %v1306_v28 = vpop.permute.xlu1 %1305 }
 0xb75   :  { %v3817_v29 = vadd.f32 %v1306_v28, %v1290_v26 }
 0xb76   :  { %3267 = vtanh.f32 %v3815_v27 }
 0xb77   :  { %3269 = vtanh.f32 %v3817_v29 }
 0xb7d   :  { %v1358_v60 = vpop.permute.xlu0 %1357 }
 0xb7e   :  { %v3823_v63 = vadd.f32 %v1358_v60, %v1343_v34  ;;  %v1360_v37 = vpop.permute.xlu1 %1359 }
 0xb7f   :  { %v3825_v39 = vadd.f32 %v1360_v37, %v1344_v36 }
 0xb80   :  { %3271 = vtanh.f32 %v3823_v63  ;;  %v3268_v40 = vpop.eup %3267 }
 0xb81   :  { %3273 = vtanh.f32 %v3825_v39  ;;  %v3270_v41 = vpop.eup %3269  ;;  %1315 = vrot.lane.b32.xlu0 %v3268_v40, %s3428_s25 }
 0xb82   :  { %1317 = vrot.lane.b32.xlu1 %v3270_v41, %s3428_s25 }
 0xb8a   :  { %v3272_v35 = vpop.eup %3271 }
 0xb8b   :  { %v3274_v5 = vpop.eup %3273  ;;  %1369 = vrot.lane.b32.xlu0 %v3272_v35, %s3428_s25 }
 0xb8c   :  { %1371 = vrot.lane.b32.xlu1 %v3274_v5, %s3428_s25 }
 0xbf3   :  { %v1316_v12 = vpop.permute.xlu0 %1315 }
 0xbf4   :  { %v1321_v42 = vmul.f32 %v3260_v3, %v1316_v12  ;;  %v1318_v8 = vpop.permute.xlu1 %1317 }
 0xbf5   :  { %v1322_v45 = vmul.f32 %v3262_v6, %v1318_v8 }
 0xbf6   :  { %v1379_v46 = vrot.slane %v1321_v42, 3 }
 0xbf7   :  { %v1380_v16 = vrot.slane %v1322_v45, 2 }
 0xbf9   :  { %v1381_v18 = vsel %vm542_vm6, %v1380_v16, %v1379_v46 }
 0xbfa   :  { %1382 = vrot.lane.b32.xlu0 %v1381_v18, %s3427_s24  ;;  %v1565_v18 = vrot.slane %v3815_v27, 7 }
 0xbfd   :  { %v1370_v47 = vpop.permute.xlu0 %1369 }
 0xbfe   :  { %v1375_v48 = vmul.f32 %v3264_v11, %v1370_v47  ;;  %v1372_v49 = vpop.permute.xlu1 %1371  ;;  %v1566_v47 = vrot.slane %v3817_v29, 7 }
 0xbff   :  { %v1376_v50 = vmul.f32 %v3266_v14, %v1372_v49 }
 0xc00   :  { %v1465_v51 = vrot.slane %v1375_v48, 4 }
 0xc01   :  { %v1466_v52 = vrot.slane %v1376_v50, 3 }
 0xc03   :  { %v1467_v53 = vsel %vm542_vm6, %v1466_v52, %v1465_v51 }
 0xc04   :  { %1468 = vrot.lane.b32.xlu1 %v1467_v53, %s3427_s24 }
 0xc6c   :  { %v1383_v54 = vpop.permute.xlu0 %1382 }
 0xc6d   :  { %2903 = vmatmul.mubr.msk.f32.vlgmr.msra.gmra.mrb[6].mxu0 %vm67_vm2, %v1383_v54  ;;  %v1619_v54 = vrot.slane %v3823_v63, 1 }
 0xc6e   :  { %3095 = vmatpush3.bf16.msra.mxu0 %v3585_v58  ;;  %2924 = vmatprep.mubr.msk.f32.mxu0 %vm3431_vm5, %v3429_v56 }
 0xc6f   :  { %3096 = vmatprep.subr.bf16.mxu0 %v3430_v57 }
 0xc72   :  { %3098 = vmatpush3.bf16.msra.mxu0 %v3596_v61 }
 0xc73   :  { %3105 = vmatprep.subr.bf16.mxu0 %v3430_v57 }
 0xc76   :  { %v1469_v55 = vpop.permute.xlu1 %1468 }
 0xc77   :  { %2914 = vmatmul.mubr.msk.f32.vlgmr.msra.gmra.mrb[16].mxu1 %vm67_vm2, %v1469_v55  ;;  %v1620_v55 = vrot.slane %v3825_v39, 1 }
 0xc78   :  { %3101 = vmatpush3.bf16.msra.mxu1 %v3619_v7  ;;  %2935 = vmatprep.mubr.msk.f32.mxu1 %vm3431_vm5, %v3429_v56 }
 0xc79   :  { %3102 = vmatprep.subr.bf16.mxu1 %v3430_v57 }
 0xc7c   :  { %3104 = vmatpush3.bf16.msra.mxu1 %v3630_v10 }
 0xc7d   :  { %3111 = vmatprep.subr.bf16.mxu1 %v3430_v57 }
 0xd40   :  { %v1452_v59 = vpop.f32.mrb[6].mxu0 }
 0xd41   :  { %v1457_v62 = vrot.slane %v1452_v59, 4  ;;  %v1458_v0 = vrot.slane %v1452_v59, 5  ;;  %v2904_v1 = vpop.f32.mrb[7].mxu0 }
 0xd43   :  { %v1461_v2 = vadd.f32 %v1457_v62, %v3647_v20  ;;  %v1462_v38 = vadd.f32 %v1458_v0, %v3649_v23 }
 0xd45   :  { %3275 = vtanh.f32 %v1461_v2  ;;  %v2652_v17 = vmul.f32 -1.442695, %v1461_v2  ;;  %v2653_v19 = vmul.f32 -1.442695, %v1462_v38 }
 0xd46   :  { %3277 = vtanh.f32 %v1462_v38 }
 0xd4a   :  { %v1538_v3 = vpop.f32.mrb[16].mxu1 }
 0xd4b   :  { %v1543_v4 = vrot.slane %v1538_v3, 5  ;;  %v1544_v6 = vrot.slane %v1538_v3, 6  ;;  %v2915_v9 = vpop.f32.mrb[17].mxu1 }
 0xd4d   :  { %v1547_v43 = vadd.f32 %v1543_v4, %v3653_v30  ;;  %v1548_v44 = vadd.f32 %v1544_v6, %v3655_v31 }
 0xd4f   :  { %3279 = vtanh.f32 %v1547_v43  ;;  %v3276_v11 = vpop.eup %3275  ;;  %v2654_v21 = vmul.f32 -1.442695, %v1547_v43  ;;  %v2655_v22 = vmul.f32 -1.442695, %v1548_v44 }
 0xd50   :  { %3281 = vtanh.f32 %v1548_v44  ;;  %v3278_v13 = vpop.eup %3277  ;;  %1573 = vrot.lane.b32.xlu0 %v3276_v11, %s3428_s25 }
 0xd51   :  { %1575 = vrot.lane.b32.xlu1 %v3278_v13, %s3428_s25  ;;  %3283 = vpow2.f32 %v2652_v17 }
 0xd52   :  { %3285 = vpow2.f32 %v2653_v19 }
 0xd53   :  { %3287 = vpow2.f32 %v2654_v21 }
 0xd54   :  { %3289 = vpow2.f32 %v2655_v22 }
 0xd59   :  { %v3280_v14 = vpop.eup %3279 }
 0xd5a   :  { %v3282_v15 = vpop.eup %3281  ;;  %1627 = vrot.lane.b32.xlu0 %v3280_v14, %s3428_s25 }
 0xd5b   :  { %1629 = vrot.lane.b32.xlu1 %v3282_v15, %s3428_s25  ;;  %v3284_v24 = vpop.eup %3283 }
 0xd5c   :  { %v3286_v25 = vpop.eup %3285  ;;  %v1555_v26 = vadd.f32 1.0, %v3284_v24 }
 0xd5d   :  { %v1556_v28 = vadd.f32 1.0, %v3286_v25  ;;  %v3288_v32 = vpop.eup %3287 }
 0xd5e   :  { %3291 = vrcp.f32 %v1555_v26  ;;  %v3290_v33 = vpop.eup %3289  ;;  %v1609_v34 = vadd.f32 1.0, %v3288_v32 }
 0xd5f   :  { %3293 = vrcp.f32 %v1556_v28  ;;  %v1610_v60 = vadd.f32 1.0, %v3290_v33 }
 0xd60   :  { %3295 = vrcp.f32 %v1609_v34 }
 0xd61   :  { %3297 = vrcp.f32 %v1610_v60 }
 0xd68   :  { %v3292_v36 = vpop.eup %3291 }
 0xd69   :  { %v3294_v40 = vpop.eup %3293  ;;  %v1569_v48 = vmul.f32 %v3292_v36, %v1565_v18 }
 0xd6a   :  { %v3296_v12 = vpop.eup %3295  ;;  %v1570_v50 = vmul.f32 %v3294_v40, %v1566_v47 }
 0xd6b   :  { %v3298_v8 = vpop.eup %3297  ;;  %v1623_v59 = vmul.f32 %v3296_v12, %v1619_v54 }
 0xd6c   :  { %v1624_v62 = vmul.f32 %v3298_v8, %v1620_v55 }
 0xdc2   :  { %v1574_v37 = vpop.permute.xlu0 %1573 }
 0xdc3   :  { %v1579_v41 = vmul.f32 %v3292_v36, %v1574_v37  ;;  %v1576_v35 = vpop.permute.xlu1 %1575 }
 0xdc4   :  { %v1580_v5 = vmul.f32 %v3294_v40, %v1576_v35 }
 0xdc5   :  { %1583 = vrot.lane.b32.xlu0 %v1579_v41, %s3427_s24 }
 0xdc6   :  { %1585 = vrot.lane.b32.xlu1 %v1580_v5, %s3427_s24 }
 0xdcc   :  { %v1628_v42 = vpop.permute.xlu0 %1627 }
 0xdcd   :  { %v1633_v45 = vmul.f32 %v3296_v12, %v1628_v42  ;;  %v1630_v46 = vpop.permute.xlu1 %1629 }
 0xdce   :  { %v1634_v16 = vmul.f32 %v3298_v8, %v1630_v46 }
 0xdcf   :  { %1637 = vrot.lane.b32.xlu0 %v1633_v45, %s3427_s24 }
 0xdd0   :  { %1639 = vrot.lane.b32.xlu1 %v1634_v16, %s3427_s24 }
 0xe37   :  { %v1584_v49 = vpop.permute.xlu0 %1583 }
 0xe38   :  { %v3865_v51 = vadd.f32 %v1584_v49, %v1569_v48  ;;  %v1586_v52 = vpop.permute.xlu1 %1585 }
 0xe39   :  { %v3867_v53 = vadd.f32 %v1586_v52, %v1570_v50 }
 0xe3a   :  { %3299 = vtanh.f32 %v3865_v51 }
 0xe3b   :  { %3301 = vtanh.f32 %v3867_v53 }
 0xe41   :  { %v1638_v27 = vpop.permute.xlu0 %1637 }
 0xe42   :  { %v3873_v29 = vadd.f32 %v1638_v27, %v1623_v59  ;;  %v1640_v0 = vpop.permute.xlu1 %1639 }
 0xe43   :  { %v3875_v1 = vadd.f32 %v1640_v0, %v1624_v62 }
 0xe44   :  { %3303 = vtanh.f32 %v3873_v29  ;;  %v3300_v2 = vpop.eup %3299 }
 0xe45   :  { %3305 = vtanh.f32 %v3875_v1  ;;  %v3302_v38 = vpop.eup %3301  ;;  %1595 = vrot.lane.b32.xlu0 %v3300_v2, %s3428_s25 }
 0xe46   :  { %1597 = vrot.lane.b32.xlu1 %v3302_v38, %s3428_s25 }
 0xe4e   :  { %v3304_v63 = vpop.eup %3303 }
 0xe4f   :  { %v3306_v39 = vpop.eup %3305  ;;  %1649 = vrot.lane.b32.xlu0 %v3304_v63, %s3428_s25 }
 0xe50   :  { %1651 = vrot.lane.b32.xlu1 %v3306_v39, %s3428_s25 }
 0xeb7   :  { %v1596_v3 = vpop.permute.xlu0 %1595 }
 0xeb8   :  { %v1601_v4 = vmul.f32 %v3292_v36, %v1596_v3  ;;  %v1598_v6 = vpop.permute.xlu1 %1597 }
 0xeb9   :  { %v1602_v9 = vmul.f32 %v3294_v40, %v1598_v6 }
 0xeba   :  { %v1659_v43 = vrot.slane %v1601_v4, 4 }
 0xebb   :  { %v1660_v44 = vrot.slane %v1602_v9, 3 }
 0xebd   :  { %v1661_v11 = vsel %vm542_vm6, %v1660_v44, %v1659_v43 }
 0xebe   :  { %1662 = vrot.lane.b32.xlu0 %v1661_v11, %s3427_s24  ;;  %v1845_v11 = vrot.slane %v3865_v51, 7 }
 0xec1   :  { %v1650_v13 = vpop.permute.xlu0 %1649 }
 0xec2   :  { %v1655_v14 = vmul.f32 %v3296_v12, %v1650_v13  ;;  %v1652_v15 = vpop.permute.xlu1 %1651  ;;  %v1846_v13 = vrot.slane %v3867_v53, 7 }
 0xec3   :  { %v1656_v17 = vmul.f32 %v3298_v8, %v1652_v15 }
 0xec4   :  { %v1745_v19 = vrot.slane %v1655_v14, 3 }
 0xec5   :  { %v1746_v21 = vrot.slane %v1656_v17, 2 }
 0xec7   :  { %v1747_v22 = vsel %vm542_vm6, %v1746_v21, %v1745_v19 }
 0xec8   :  { %1748 = vrot.lane.b32.xlu1 %v1747_v22, %s3427_s24 }
 0xf30   :  { %v1663_v24 = vpop.permute.xlu0 %1662 }
 0xf31   :  { %2925 = vmatmul.mubr.msk.f32.vlgmr.msra.gmra.mrb[8].mxu0 %vm67_vm2, %v1663_v24  ;;  %v1899_v24 = vrot.slane %v3873_v29, 1 }
 0xf32   :  { %3107 = vmatpush3.bf16.msra.mxu0 %v3585_v58  ;;  %2946 = vmatprep.mubr.msk.f32.mxu0 %vm3431_vm5, %v3429_v56 }
 0xf33   :  { %3108 = vmatprep.subr.bf16.mxu0 %v3430_v57 }
 0xf36   :  { %3110 = vmatpush3.bf16.msra.mxu0 %v3596_v61 }
 0xf37   :  { %3117 = vmatprep.subr.bf16.mxu0 %v3430_v57 }
 0xf3a   :  { %v1749_v25 = vpop.permute.xlu1 %1748 }
 0xf3b   :  { %2936 = vmatmul.mubr.msk.f32.vlgmr.msra.gmra.mrb[18].mxu1 %vm67_vm2, %v1749_v25  ;;  %v1900_v25 = vrot.slane %v3875_v1, 1 }
 0xf3c   :  { %3113 = vmatpush3.bf16.msra.mxu1 %v3619_v7  ;;  %2957 = vmatprep.mubr.msk.f32.mxu1 %vm3431_vm5, %v3429_v56 }
 0xf3d   :  { %3114 = vmatprep.subr.bf16.mxu1 %v3430_v57 }
 0xf40   :  { %3116 = vmatpush3.bf16.msra.mxu1 %v3630_v10 }
 0xf41   :  { %3123 = vmatprep.subr.bf16.mxu1 %v3430_v57 }
0x1004   :  { %v1732_v26 = vpop.f32.mrb[8].mxu0 }
0x1005   :  { %v1737_v28 = vrot.slane %v1732_v26, 3  ;;  %v1738_v32 = vrot.slane %v1732_v26, 4  ;;  %v2926_v33 = vpop.f32.mrb[9].mxu0 }
0x1007   :  { %v1741_v34 = vadd.f32 %v1737_v28, %v3647_v20  ;;  %v1742_v60 = vadd.f32 %v1738_v32, %v3649_v23 }
0x1009   :  { %3307 = vtanh.f32 %v1741_v34  ;;  %v2658_v46 = vmul.f32 -1.442695, %v1741_v34  ;;  %v2659_v16 = vmul.f32 -1.442695, %v1742_v60 }
0x100a   :  { %3309 = vtanh.f32 %v1742_v60 }
0x100e   :  { %v1818_v36 = vpop.f32.mrb[18].mxu1 }
0x100f   :  { %v1823_v37 = vrot.slane %v1818_v36, 6  ;;  %v1824_v40 = vrot.slane %v1818_v36, 7  ;;  %v2937_v41 = vpop.f32.mrb[19].mxu1 }
0x1011   :  { %v1827_v35 = vadd.f32 %v1823_v37, %v3653_v30  ;;  %v1828_v5 = vadd.f32 %v1824_v40, %v3655_v31 }
0x1013   :  { %3311 = vtanh.f32 %v1827_v35  ;;  %v3308_v12 = vpop.eup %3307  ;;  %v2660_v18 = vmul.f32 -1.442695, %v1827_v35  ;;  %v2661_v47 = vmul.f32 -1.442695, %v1828_v5 }
0x1014   :  { %3313 = vtanh.f32 %v1828_v5  ;;  %v3310_v42 = vpop.eup %3309  ;;  %1853 = vrot.lane.b32.xlu0 %v3308_v12, %s3428_s25 }
0x1015   :  { %1855 = vrot.lane.b32.xlu1 %v3310_v42, %s3428_s25  ;;  %3315 = vpow2.f32 %v2658_v46 }
0x1016   :  { %3317 = vpow2.f32 %v2659_v16 }
0x1017   :  { %3319 = vpow2.f32 %v2660_v18 }
0x1018   :  { %3321 = vpow2.f32 %v2661_v47 }
0x101d   :  { %v3312_v8 = vpop.eup %3311 }
0x101e   :  { %v3314_v45 = vpop.eup %3313  ;;  %1907 = vrot.lane.b32.xlu0 %v3312_v8, %s3428_s25 }
0x101f   :  { %1909 = vrot.lane.b32.xlu1 %v3314_v45, %s3428_s25  ;;  %v3316_v48 = vpop.eup %3315 }
0x1020   :  { %v3318_v49 = vpop.eup %3317  ;;  %v1835_v50 = vadd.f32 1.0, %v3316_v48 }
0x1021   :  { %v1836_v52 = vadd.f32 1.0, %v3318_v49  ;;  %v3320_v54 = vpop.eup %3319 }
0x1022   :  { %3323 = vrcp.f32 %v1835_v50  ;;  %v3322_v55 = vpop.eup %3321  ;;  %v1889_v59 = vadd.f32 1.0, %v3320_v54 }
0x1023   :  { %3325 = vrcp.f32 %v1836_v52  ;;  %v1890_v27 = vadd.f32 1.0, %v3322_v55 }
0x1024   :  { %3327 = vrcp.f32 %v1889_v59 }
0x1025   :  { %3329 = vrcp.f32 %v1890_v27 }
0x102c   :  { %v3324_v62 = vpop.eup %3323 }
0x102d   :  { %v3326_v2 = vpop.eup %3325  ;;  %v1849_v14 = vmul.f32 %v3324_v62, %v1845_v11 }
0x102e   :  { %v3328_v3 = vpop.eup %3327  ;;  %v1850_v17 = vmul.f32 %v3326_v2, %v1846_v13 }
0x102f   :  { %v3330_v6 = vpop.eup %3329  ;;  %v1903_v26 = vmul.f32 %v3328_v3, %v1899_v24 }
0x1030   :  { %v1904_v28 = vmul.f32 %v3330_v6, %v1900_v25 }
0x1086   :  { %v1854_v0 = vpop.permute.xlu0 %1853 }
0x1087   :  { %v1859_v38 = vmul.f32 %v3324_v62, %v1854_v0  ;;  %v1856_v63 = vpop.permute.xlu1 %1855 }
0x1088   :  { %v1860_v39 = vmul.f32 %v3326_v2, %v1856_v63 }
0x1089   :  { %1863 = vrot.lane.b32.xlu0 %v1859_v38, %s3427_s24 }
0x108a   :  { %1865 = vrot.lane.b32.xlu1 %v1860_v39, %s3427_s24 }
0x1090   :  { %v1908_v4 = vpop.permute.xlu0 %1907 }
0x1091   :  { %v1913_v9 = vmul.f32 %v3328_v3, %v1908_v4  ;;  %v1910_v43 = vpop.permute.xlu1 %1909 }
0x1092   :  { %v1914_v44 = vmul.f32 %v3330_v6, %v1910_v43 }
0x1093   :  { %1917 = vrot.lane.b32.xlu0 %v1913_v9, %s3427_s24 }
0x1094   :  { %1919 = vrot.lane.b32.xlu1 %v1914_v44, %s3427_s24 }
0x10fb   :  { %v1864_v15 = vpop.permute.xlu0 %1863 }
0x10fc   :  { %v3915_v19 = vadd.f32 %v1864_v15, %v1849_v14  ;;  %v1866_v21 = vpop.permute.xlu1 %1865 }
0x10fd   :  { %v3917_v22 = vadd.f32 %v1866_v21, %v1850_v17 }
0x10fe   :  { %3331 = vtanh.f32 %v3915_v19 }
0x10ff   :  { %3333 = vtanh.f32 %v3917_v22 }
0x1105   :  { %v1918_v51 = vpop.permute.xlu0 %1917 }
0x1106   :  { %v3923_v53 = vadd.f32 %v1918_v51, %v1903_v26  ;;  %v1920_v32 = vpop.permute.xlu1 %1919 }
0x1107   :  { %v3925_v33 = vadd.f32 %v1920_v32, %v1904_v28 }
0x1108   :  { %3335 = vtanh.f32 %v3923_v53  ;;  %v3332_v34 = vpop.eup %3331 }
0x1109   :  { %3337 = vtanh.f32 %v3925_v33  ;;  %v3334_v60 = vpop.eup %3333  ;;  %1875 = vrot.lane.b32.xlu0 %v3332_v34, %s3428_s25 }
0x110a   :  { %1877 = vrot.lane.b32.xlu1 %v3334_v60, %s3428_s25 }
0x1112   :  { %v3336_v29 = vpop.eup %3335 }
0x1113   :  { %v3338_v1 = vpop.eup %3337  ;;  %1929 = vrot.lane.b32.xlu0 %v3336_v29, %s3428_s25 }
0x1114   :  { %1931 = vrot.lane.b32.xlu1 %v3338_v1, %s3428_s25 }
0x117b   :  { %v1876_v36 = vpop.permute.xlu0 %1875 }
0x117c   :  { %v1881_v37 = vmul.f32 %v3324_v62, %v1876_v36  ;;  %v1878_v40 = vpop.permute.xlu1 %1877 }
0x117d   :  { %v1882_v41 = vmul.f32 %v3326_v2, %v1878_v40  ;;  %v2125_v40 = vrot.slane %v3917_v22, 7 }
0x117e   :  { %v1939_v35 = vrot.slane %v1881_v37, 5  ;;  %v2124_v37 = vrot.slane %v3915_v19, 7 }
0x117f   :  { %v1940_v5 = vrot.slane %v1882_v41, 4 }
0x1181   :  { %v1941_v12 = vsel %vm542_vm6, %v1940_v5, %v1939_v35 }
0x1182   :  { %1942 = vrot.lane.b32.xlu0 %v1941_v12, %s3427_s24 }
0x1185   :  { %v1930_v42 = vpop.permute.xlu0 %1929 }
0x1186   :  { %v1935_v8 = vmul.f32 %v3328_v3, %v1930_v42  ;;  %v1932_v45 = vpop.permute.xlu1 %1931 }
0x1187   :  { %v1936_v46 = vmul.f32 %v3330_v6, %v1932_v45  ;;  %v2179_v45 = vrot.slane %v3925_v33, 1 }
0x1188   :  { %v2025_v16 = vrot.slane %v1935_v8, 2 }
0x1189   :  { %v2026_v18 = vrot.slane %v1936_v46, 1 }
0x118b   :  { %v2027_v47 = vsel %vm542_vm6, %v2026_v18, %v2025_v16  ;;  %v2178_v16 = vrot.slane %v3923_v53, 1 }
0x118c   :  { %2028 = vrot.lane.b32.xlu1 %v2027_v47, %s3427_s24 }
0x11f4   :  { %v1943_v48 = vpop.permute.xlu0 %1942 }
0x11f5   :  { %2947 = vmatmul.mubr.msk.f32.vlgmr.msra.gmra.mrb[10].mxu0 %vm67_vm2, %v1943_v48 }
0x11f6   :  { %3119 = vmatpush3.bf16.msra.mxu0 %v3585_v58  ;;  %2968 = vmatprep.mubr.msk.f32.mxu0 %vm3431_vm5, %v3429_v56 }
0x11f7   :  { %3120 = vmatprep.subr.bf16.mxu0 %v3430_v57 }
0x11fa   :  { %3122 = vmatpush3.bf16.msra.mxu0 %v3596_v61 }
0x11fb   :  { %3129 = vmatprep.subr.bf16.mxu0 %v3430_v57 }
0x11fe   :  { %v2029_v49 = vpop.permute.xlu1 %2028 }
0x11ff   :  { %2958 = vmatmul.mubr.msk.f32.vlgmr.msra.gmra.mrb[20].mxu1 %vm67_vm2, %v2029_v49 }
0x1200   :  { %3125 = vmatpush3.bf16.msra.mxu1 %v3619_v7  ;;  %2979 = vmatprep.mubr.msk.f32.mxu1 %vm3431_vm5, %v3429_v56 }
0x1201   :  { %3126 = vmatprep.subr.bf16.mxu1 %v3430_v57 }
0x1204   :  { %3128 = vmatpush3.bf16.msra.mxu1 %v3630_v10 }
0x12c8   :  { %v2012_v58 = vpop.f32.mrb[10].mxu0 }
0x12c9   :  { %v2017_v50 = vrot.slane %v2012_v58, 2  ;;  %v2018_v52 = vrot.slane %v2012_v58, 3  ;;  %v2948_v54 = vpop.f32.mrb[11].mxu0 }
0x12cb   :  { %v2021_v61 = vadd.f32 %v2017_v50, %v3647_v20  ;;  %v2022_v55 = vadd.f32 %v2018_v52, %v3649_v23 }
0x12cd   :  { %3339 = vtanh.f32 %v2021_v61  ;;  %v2664_v39 = vmul.f32 -1.442695, %v2021_v61  ;;  %v2665_v3 = vmul.f32 -1.442695, %v2022_v55 }
0x12ce   :  { %3341 = vtanh.f32 %v2022_v55 }
0x12d2   :  { %v2098_v59 = vpop.f32.mrb[20].mxu1 }
0x12d3   :  { %v2103_v27 = vrot.slane %v2098_v59, 7  ;;  %v2107_v7 = vadd.f32 %v2098_v59, %v3655_v31  ;;  %v2959_v62 = vpop.f32.mrb[21].mxu1 }
0x12d5   :  { %v2106_v0 = vadd.f32 %v2103_v27, %v3653_v30  ;;  %3343 = vtanh.f32 %v2107_v7  ;;  %v2667_v4 = vmul.f32 -1.442695, %v2107_v7 }
0x12d7   :  { %3345 = vtanh.f32 %v2106_v0  ;;  %v3340_v10 = vpop.eup %3339  ;;  %v2666_v6 = vmul.f32 -1.442695, %v2106_v0 }
0x12d8   :  { %v3342_v2 = vpop.eup %3341  ;;  %2132 = vrot.lane.b32.xlu0 %v3340_v10, %s3428_s25  ;;  %3347 = vpow2.f32 %v2664_v39 }
0x12d9   :  { %2134 = vrot.lane.b32.xlu1 %v3342_v2, %s3428_s25  ;;  %3349 = vpow2.f32 %v2665_v3 }
0x12da   :  { %3351 = vpow2.f32 %v2667_v4 }
0x12db   :  { %3353 = vpow2.f32 %v2666_v6 }
0x12df   :  { %v3344_v38 = vpop.eup %3343 }
0x12e0   :  { %2188 = vrot.lane.b32.xlu1 %v3344_v38, %s3428_s25 }
0x12e1   :  { %v3346_v63 = vpop.eup %3345 }
0x12e2   :  { %2186 = vrot.lane.b32.xlu0 %v3346_v63, %s3428_s25  ;;  %v3348_v9 = vpop.eup %3347 }
0x12e3   :  { %v3350_v43 = vpop.eup %3349  ;;  %v2114_v44 = vadd.f32 1.0, %v3348_v9 }
0x12e4   :  { %v2115_v11 = vadd.f32 1.0, %v3350_v43  ;;  %v3352_v13 = vpop.eup %3351 }
0x12e5   :  { %3355 = vrcp.f32 %v2114_v44  ;;  %v3354_v14 = vpop.eup %3353  ;;  %v2169_v15 = vadd.f32 1.0, %v3352_v13 }
0x12e6   :  { %3357 = vrcp.f32 %v2115_v11  ;;  %v2168_v17 = vadd.f32 1.0, %v3354_v14 }
0x12e7   :  { %3359 = vrcp.f32 %v2169_v15 }
0x12e8   :  { %3361 = vrcp.f32 %v2168_v17 }
0x12ef   :  { %v3356_v21 = vpop.eup %3355 }
0x12f0   :  { %v3358_v25 = vpop.eup %3357  ;;  %v2128_v41 = vmul.f32 %v3356_v21, %v2124_v37 }
0x12f1   :  { %v3360_v32 = vpop.eup %3359  ;;  %v2129_v5 = vmul.f32 %v3358_v25, %v2125_v40 }
0x12f2   :  { %v3362_v29 = vpop.eup %3361  ;;  %v2183_v46 = vmul.f32 %v3360_v32, %v2179_v45 }
0x12f3   :  { %v2182_v22 = vmul.f32 %v3362_v29, %v2178_v16 }
0x134a   :  { %v2133_v24 = vpop.permute.xlu0 %2132 }
0x134b   :  { %v2138_v26 = vmul.f32 %v3356_v21, %v2133_v24  ;;  %v2135_v51 = vpop.permute.xlu1 %2134 }
0x134c   :  { %v2139_v28 = vmul.f32 %v3358_v25, %v2135_v51 }
0x134d   :  { %2142 = vrot.lane.b32.xlu0 %v2138_v26, %s3427_s24 }
0x134e   :  { %2144 = vrot.lane.b32.xlu1 %v2139_v28, %s3427_s24 }
0x1352   :  { %v2189_v34 = vpop.permute.xlu1 %2188 }
0x1353   :  { %v2193_v60 = vmul.f32 %v3360_v32, %v2189_v34 }
0x1354   :  { %v2187_v1 = vpop.permute.xlu0 %2186 }
0x1355   :  { %2198 = vrot.lane.b32.xlu1 %v2193_v60, %s3427_s24  ;;  %v2192_v36 = vmul.f32 %v3362_v29, %v2187_v1 }
0x1357   :  { %2196 = vrot.lane.b32.xlu0 %v2192_v36, %s3427_s24 }
0x13bf   :  { %v2143_v35 = vpop.permute.xlu0 %2142 }
0x13c0   :  { %v3964_v12 = vadd.f32 %v2143_v35, %v2128_v41  ;;  %v2145_v42 = vpop.permute.xlu1 %2144 }
0x13c1   :  { %v3966_v8 = vadd.f32 %v2145_v42, %v2129_v5 }
0x13c2   :  { %3363 = vtanh.f32 %v3964_v12 }
0x13c3   :  { %3365 = vtanh.f32 %v3966_v8 }
0x13c7   :  { %v2199_v19 = vpop.permute.xlu1 %2198 }
0x13c8   :  { %v3972_v18 = vadd.f32 %v2199_v19, %v2183_v46 }
0x13c9   :  { %v2197_v47 = vpop.permute.xlu0 %2196 }
0x13ca   :  { %3367 = vtanh.f32 %v3972_v18  ;;  %v3975_v48 = vadd.f32 %v2197_v47, %v2182_v22  ;;  %v2403_v47 = vrot.slane %v3966_v8, 7 }
0x13cc   :  { %3369 = vtanh.f32 %v3975_v48  ;;  %v3364_v49 = vpop.eup %3363 }
0x13cd   :  { %v3366_v33 = vpop.eup %3365  ;;  %2154 = vrot.lane.b32.xlu0 %v3364_v49, %s3428_s25 }
0x13ce   :  { %2156 = vrot.lane.b32.xlu1 %v3366_v33, %s3428_s25 }
0x13d4   :  { %v3368_v58 = vpop.eup %3367 }
0x13d5   :  { %2210 = vrot.lane.b32.xlu1 %v3368_v58, %s3428_s25  ;;  %v2402_v58 = vrot.slane %v3964_v12, 7  ;;  %v2514_v12 = vld [vmem:[%s4081_s7] sm:$0xff] }
0x13d6   :  { %v3370_v53 = vpop.eup %3369 }
0x13d7   :  { %2208 = vrot.lane.b32.xlu0 %v3370_v53, %s3428_s25 }
0x143f   :  { %v2155_v50 = vpop.permute.xlu0 %2154 }
0x1440   :  { %v2160_v52 = vmul.f32 %v3356_v21, %v2155_v50  ;;  %v2157_v54 = vpop.permute.xlu1 %2156  ;;  %v2456_v50 = vrot.slane %v3975_v48, 1  ;;  %v2515_v48 = vld [vmem:[%s4081_s7 + $0x8] sm:$0xff] }
0x1441   :  { %v2161_v61 = vmul.f32 %v3358_v25, %v2157_v54 }
0x1442   :  { %v2218_v55 = vrot.slane %v2160_v52, 6 }
0x1443   :  { %v2219_v59 = vrot.slane %v2161_v61, 5 }
0x1445   :  { %v2220_v27 = vsel %vm542_vm6, %v2219_v59, %v2218_v55 }
0x1446   :  { %2221 = vrot.lane.b32.xlu0 %v2220_v27, %s3427_s24  ;;  %v2457_v27 = vrot.slane %v3972_v18, 1 }
0x1447   :  { %v2211_v7 = vpop.permute.xlu1 %2210 }
0x1448   :  { %v2215_v10 = vmul.f32 %v3360_v32, %v2211_v7 }
0x1449   :  { %v2209_v62 = vpop.permute.xlu0 %2208 }
0x144a   :  { %v2214_v0 = vmul.f32 %v3362_v29, %v2209_v62 }
0x144c   :  { %v2304_v2 = vrot.slane %v2214_v0, 1 }
0x144e   :  { %v2305_v38 = vsel %vm542_vm6, %v2215_v10, %v2304_v2  ;;  %v3130_v2 = vpack.c.bf16 %v2515_v48, %v2514_v12 }
0x144f   :  { %2306 = vrot.lane.b32.xlu1 %v2305_v38, %s3427_s24 }
0x14b8   :  { %v2222_v63 = vpop.permute.xlu0 %2221 }
0x14b9   :  { %2969 = vmatmul.mubr.msk.f32.vlgmr.msra.gmra.mrb[12].mxu0 %vm67_vm2, %v2222_v63 }
0x14ba   :  { %2998 = vmatprep.mubr.msk.f32.mxu0 %vm3431_vm5, %v3429_v56  ;;  %3131 = vmatpush3.bf16.msra.mxu0 %v3130_v2 }
0x14bb   :  { %3132 = vmatprep.subr.bf16.mxu0 %v3430_v57 }
0x14c1   :  { %v2307_v39 = vpop.permute.xlu1 %2306 }
0x14c2   :  { %2980 = vmatmul.mubr.msk.f32.vlgmr.msra.gmra.mrb[22].mxu1 %vm67_vm2, %v2307_v39  ;;  %v2516_v39 = vld [vmem:[%s4081_s7 + $0x10] sm:$0xff] }
0x158c   :  { %v2291_v3 = vpop.f32.mrb[12].mxu0 }
0x158d   :  { %v2297_v4 = vrot.slane %v2291_v3, 2  ;;  %v2970_v6 = vpop.f32.mrb[13].mxu0  ;;  %v2296_v9 = vrot.slane %v2291_v3, 1  ;;  %v2517_v3 = vld [vmem:[%s4081_s7 + $0x18] sm:$0xff] }
0x158e   :  { %v2518_v6 = vld [vmem:[%s4081_s7 + $0x20] sm:$0xff] }
0x158f   :  { %v2301_v43 = vadd.f32 %v2297_v4, %v3649_v23  ;;  %v2300_v44 = vadd.f32 %v2296_v9, %v3647_v20  ;;  %v3133_v4 = vpack.c.bf16 %v2517_v3, %v2516_v39  ;;  %v2519_v9 = vld [vmem:[%s4081_s7 + $0x28] sm:$0xff] }
0x1591   :  { %3371 = vtanh.f32 %v2301_v43  ;;  %v2671_v23 = vmul.f32 -1.442695, %v2301_v43  ;;  %3134 = vmatpush3.bf16.msra.mxu0 %v3133_v4  ;;  %v3136_v43 = vpack.c.bf16 %v2519_v9, %v2518_v6 }
0x1592   :  { %3373 = vtanh.f32 %v2300_v44  ;;  %3135 = vmatprep.subr.bf16.mxu0 %v3430_v57 }
0x1595   :  { %v2376_v11 = vpop.f32.mrb[22].mxu1  ;;  %3137 = vmatpush3.bf16.msra.mxu0 %v3136_v43 }
0x1596   :  { %v2381_v13 = vrot.slane %v2376_v11, 1  ;;  %v2384_v14 = vadd.f32 %v2376_v11, %v3653_v30  ;;  %v2981_v15 = vpop.f32.mrb[23].mxu1  ;;  %v2670_v30 = vmul.f32 -1.442695, %v2300_v44  ;;  %3138 = vmatprep.subr.bf16.mxu0 %v3430_v57  ;;  %v2520_v44 = vld [vmem:[%s4081_s7 + $0x30] sm:$0xff]  ;;  %v2521_v11 = vld [vmem:[%s4081_s7 + $0x38] sm:$0xff] }
0x1598   :  { %v2385_v56 = vadd.f32 %v2381_v13, %v3655_v31  ;;  %3375 = vtanh.f32 %v2384_v14  ;;  %v2672_v25 = vmul.f32 -1.442695, %v2384_v14  ;;  %v3139_v13 = vpack.c.bf16 %v2521_v11, %v2520_v44 }
0x159a   :  { %3377 = vtanh.f32 %v2385_v56  ;;  %v2673_v31 = vmul.f32 -1.442695, %v2385_v56  ;;  %3140 = vmatpush3.bf16.msra.mxu0 %v3139_v13 }
0x159b   :  { %v3372_v17 = vpop.eup %3371  ;;  %3379 = vpow2.f32 %v2671_v23 }
0x159c   :  { %2412 = vrot.lane.b32.xlu0 %v3372_v17, %s3428_s25  ;;  %v3374_v21 = vpop.eup %3373  ;;  %3381 = vpow2.f32 %v2670_v30 }
0x159d   :  { %3383 = vpow2.f32 %v2672_v25 }
0x159e   :  { %3385 = vpow2.f32 %v2673_v31 }
0x15a0   :  { %2410 = vrot.lane.b32.xlu0 %v3374_v21, %s3428_s25 }
0x15a2   :  { %v3376_v24 = vpop.eup %3375 }
0x15a3   :  { %2464 = vrot.lane.b32.xlu1 %v3376_v24, %s3428_s25 }
0x15a4   :  { %v3378_v20 = vpop.eup %3377 }
0x15a5   :  { %v3380_v26 = vpop.eup %3379 }
0x15a6   :  { %v2393_v51 = vadd.f32 1.0, %v3380_v26  ;;  %v3382_v28 = vpop.eup %3381 }
0x15a7   :  { %2466 = vrot.lane.b32.xlu1 %v3378_v20, %s3428_s25  ;;  %v3384_v32 = vpop.eup %3383  ;;  %v2392_v34 = vadd.f32 1.0, %v3382_v28 }
0x15a8   :  { %3387 = vrcp.f32 %v2393_v51  ;;  %v2446_v60 = vadd.f32 1.0, %v3384_v32  ;;  %v3386_v29 = vpop.eup %3385 }
0x15a9   :  { %3389 = vrcp.f32 %v2392_v34  ;;  %v2447_v1 = vadd.f32 1.0, %v3386_v29 }
0x15aa   :  { %3391 = vrcp.f32 %v2446_v60 }
0x15ab   :  { %3393 = vrcp.f32 %v2447_v1  ;;  %v2674_v1 = vld [vmem:[%s4082_s8] ss:$0 sm:$0xff] }
0x15b2   :  { %v3998_v36 = vpop.eup %3387 }
0x15b3   :  { %v4002_v41 = vpop.eup %3389  ;;  %v2407_v49 = vmul.f32 %v3998_v36, %v2403_v47 }
0x15b4   :  { %v4004_v5 = vpop.eup %3391  ;;  %v2406_v52 = vmul.f32 %v4002_v41, %v2402_v58 }
0x15b5   :  { %v3394_v16 = vpop.eup %3393  ;;  %v2460_v61 = vmul.f32 %v4004_v5, %v2456_v50 }
0x15b6   :  { %v2461_v8 = vmul.f32 %v3394_v16, %v2457_v27 }
0x160e   :  { %v2413_v37 = vpop.permute.xlu0 %2412 }
0x160f   :  { %v2417_v40 = vmul.f32 %v3998_v36, %v2413_v37 }
0x1611   :  { %2422 = vrot.lane.b32.xlu0 %v2417_v40, %s3427_s24 }
0x1612   :  { %v2411_v35 = vpop.permute.xlu0 %2410 }
0x1613   :  { %v2416_v42 = vmul.f32 %v4002_v41, %v2411_v35 }
0x1615   :  { %v2465_v45 = vpop.permute.xlu1 %2464  ;;  %2420 = vrot.lane.b32.xlu0 %v2416_v42, %s3427_s24 }
0x1616   :  { %v2470_v46 = vmul.f32 %v4004_v5, %v2465_v45 }
0x1618   :  { %2474 = vrot.lane.b32.xlu1 %v2470_v46, %s3427_s24 }
0x1619   :  { %v2467_v19 = vpop.permute.xlu1 %2466 }
0x161a   :  { %v2471_v22 = vmul.f32 %v3394_v16, %v2467_v19 }
0x161c   :  { %2476 = vrot.lane.b32.xlu1 %v2471_v22, %s3427_s24 }
0x1683   :  { %v2423_v33 = vpop.permute.xlu0 %2422 }
0x1684   :  { %v2427_v53 = vadd.f32 %v2423_v33, %v2407_v49 }
0x1686   :  { %3395 = vtanh.f32 %v2427_v53 }
0x1687   :  { %v2421_v54 = vpop.permute.xlu0 %2420 }
0x1688   :  { %v2426_v55 = vadd.f32 %v2421_v54, %v2406_v52 }
0x168a   :  { %v2475_v59 = vpop.permute.xlu1 %2474  ;;  %3397 = vtanh.f32 %v2426_v55 }
0x168b   :  { %v2480_v7 = vadd.f32 %v2475_v59, %v2460_v61 }
0x168d   :  { %3399 = vtanh.f32 %v2480_v7 }
0x168e   :  { %v2477_v62 = vpop.permute.xlu1 %2476 }
0x168f   :  { %v2481_v0 = vadd.f32 %v2477_v62, %v2461_v8 }
0x1690   :  { %v3396_v10 = vpop.eup %3395 }
0x1691   :  { %3401 = vtanh.f32 %v2481_v0  ;;  %2434 = vrot.lane.b32.xlu0 %v3396_v10, %s3428_s25 }
0x1694   :  { %v3398_v18 = vpop.eup %3397 }
0x1695   :  { %2432 = vrot.lane.b32.xlu0 %v3398_v18, %s3428_s25 }
0x1697   :  { %v3400_v38 = vpop.eup %3399 }
0x1698   :  { %2486 = vrot.lane.b32.xlu1 %v3400_v38, %s3428_s25 }
0x169b   :  { %v3402_v63 = vpop.eup %3401 }
0x169c   :  { %2488 = vrot.lane.b32.xlu1 %v3402_v63, %s3428_s25 }
0x1703   :  { %v2435_v14 = vpop.permute.xlu0 %2434 }
0x1704   :  { %v2439_v15 = vmul.f32 %v3998_v36, %v2435_v14 }
0x1706   :  { %v2496_v56 = vrot.slane %v2439_v15, 7 }
0x1707   :  { %v2433_v17 = vpop.permute.xlu0 %2432 }
0x1708   :  { %v2438_v21 = vmul.f32 %v4002_v41, %v2433_v17  ;;  %2499 = vrot.lane.b32.xlu1 %v2496_v56, %s3427_s24 }
0x170a   :  { %v2487_v24 = vpop.permute.xlu1 %2486  ;;  %2497 = vrot.lane.b32.xlu0 %v2438_v21, %s3427_s24 }
0x170b   :  { %v2492_v57 = vmul.f32 %v4004_v5, %v2487_v24 }
0x170d   :  { %v2505_v20 = vrot.slane %v2492_v57, 1 }
0x170e   :  { %v2489_v23 = vpop.permute.xlu1 %2488 }
0x170f   :  { %v2493_v30 = vmul.f32 %v3394_v16, %v2489_v23  ;;  %2506 = vrot.lane.b32.xlu0 %v2505_v20, %s3428_s25 }
0x1711   :  { %2508 = vrot.lane.b32.xlu1 %v2493_v30, %s3428_s25  ;;  %s2615_s25 = sshll.u32 %s3432_s5, 4  ;;  %s2616_s25 = int_to_ptr.vmem [resolvable:$true] %s2615_s25 }
0x1712   :  { %s3403_s26 = scalar_lea.vmem %s2616_s25, 32  ;;  %p3408_p1 = scmp.lt.s32.totalorder %s2616_s25, %s2616_s25 }
0x1713   :  { %p3404_p0 = scmp.ne.s32.totalorder %s2616_s25, %s3403_s26  ;;  %p3409_p2 = scmp.lt.s32.totalorder %s3403_s26, %s3403_s26 }
0x1715   :  { %p3410_p3 = por %p3409_p2, %p3408_p1 }
0x1717   :  { %p3411_p4 = pnand %p3410_p3, %p3404_p0 }
0x177a   :  { %v2500_v31 = vpop.permute.xlu1 %2499 }
0x177c   :  { %v2498_v25 = vpop.permute.xlu0 %2497 }
0x1781   :  { %v2507_v26 = vpop.permute.xlu0 %2506 }
0x1782   :  { %v2512_v51 = vsel %vm67_vm2, %v2498_v25, %v2507_v26 }
0x1783   :  { %v2509_v28 = vpop.permute.xlu1 %2508  ;;  %v2532_v32 = vrot.slane %v2512_v51, 7 }
0x1784   :  { %v2513_v34 = vsel %vm67_vm2, %v2500_v31, %v2509_v28 }
0x1785   :  { %v2533_v60 = vrot.slane %v2513_v34, 7 }
0x1787   :  { %v2534_v29 = vsel %vm2531_vm7, %v2532_v32, %v2533_v60 }
0x1788   :  { %2999 = vmatmul.mubr.msk.f32.vlgmr.msra.gmra.mrb[14].mxu0 %vm70_vm3, %v2534_v29 }
0x185b   :  { %v2603_v36 = vpop.f32.mrb[14].mxu0 }
0x185c   :  { %v2604_v37 = vadd.f32 %v2674_v1, %v2603_v36  ;;  %v3000_v40 = vpop.f32.mrb[15].mxu0 }
0x185e   :  { %2608 = vst.msk [vmem:[#allocation2] sm:$0x3] %vm2607_vm8, %v2604_v37 }
0x185f   :  { %3414 = shalt.err (!%p3411_p4)
}
0x1860   :  { %s3415_s28 = scalar_lea.hbm %s4083_s9, 32 }
0x1861   :  { %p3416_p5 = scmp.ne.s32.totalorder %s4083_s9, %s3415_s28  ;;  %p3419_p6 = scmp.lt.u32.totalorder %s3415_s28, %s4083_s9 }
0x1863   :  { %p3421_p7 = pnand %p3419_p6, %p3416_p5 }
0x1865   :  { %3424 = shalt.err (!%p3421_p7)
}
0x1866   :  { %2618 = dma.vmem_to_hbm [thread:$0]  %s2616_s25, 32, %s4083_s9, [#allocation3]  }
0x1867   :  { %3425 = dma.done.wait [#allocation3], 32  }
0x1868   :  { %3426 = vsyncadd [#allocation3], 4294967264 }
0x1869   :  { %2622 = vsyncpa [#allocation3], 1 }

</bundles_post_ra>
